<compile_context>
chip_gen: v5e
topology: v5e:2x2
jax: 0.10.0
libtpu: 0.0.40
codegen_flags: <defaults>
</compile_context>

<pallas_src>
import math
import functools

import jax
import jax.numpy as jnp
from jax.experimental import pallas as pl
from jax.experimental.pallas import tpu as pltpu

LANE = 128


def _round_up(x, m):
    return ((x + m - 1) // m) * m


# ---------------------------------------------------------------------------
# Fused recurrent kernel: one grid step == one LEM ODE sub-step.
# ---------------------------------------------------------------------------
def _lem_fused_kernel(
        # scalar prefetch (SMEM)
        t_idx_ref,       # (S,) i32 : timestep index of this substep
        first_ref,       # (S,) i32 : 1 if first substep of its timestep
        # inputs
        delta_ref,       # (S,)  f32 SMEM : dt[t] / divider[t]
        x_in_ref,        # (1, B, NP) : lane-padded inputs[t]
        noise_ref,       # (1, B, 2H) : pre-scaled noise add [y | z]
        wxy_ref,         # (NP+H, 4H) : stacked [inp2hid ; hid2hid (zero i_z)]
        bxy_ref,         # (B, 4H)    : bi + bh (pre-broadcast)
        wz_ref,          # (H, H)
        bz_ref,          # (B, H)
        wc_ref,          # (H, NP)    : classifier, lane-padded output
        bc_ref,          # (B, NP)
        # outputs
        y_out_ref,       # (1, B, H)  : post-noise hidden y per timestep
        # scratch (persist across grid steps)
        y_scr, z_scr, xy_scr,
        *, nhid, ninp_pad):
    H = nhid
    NP = ninp_pad
    s = pl.program_id(0)
    delta = delta_ref[s]
    is_first = first_ref[s]

    @pl.when(s == 0)
    def _():
        y_scr[...] = jnp.zeros_like(y_scr)
        z_scr[...] = jnp.zeros_like(z_scr)

    # First substep of a timestep consumes inputs[t]; later substeps reuse the
    # classifier feedback already stored in xy_scr[:, :NP] by the previous step.
    @pl.when(is_first == 1)
    def _():
        xy_scr[:, :NP] = x_in_ref[0]

    y = y_scr[...]
    z = z_scr[...]
    xy_scr[:, NP:] = y

    # Single MXU push covering inp2hid + hid2hid (gate sums come out pre-added).
    txy = jnp.dot(xy_scr[...], wxy_ref[...],
                  preferred_element_type=jnp.float32) + bxy_ref[...]
    g_dt1 = txy[:, 0 * H:1 * H]      # i_dt1 + h_dt1
    g_dt2 = txy[:, 1 * H:2 * H]      # i_dt2 + h_dt2
    i_z = txy[:, 2 * H:3 * H]        # i_z   (hid2hid block is zero here)
    g_y = txy[:, 3 * H:4 * H]        # i_y + h_y

    ms_dt_bar = delta * jax.nn.sigmoid(g_dt1)
    ms_dt = delta * jax.nn.sigmoid(g_dt2)

    z_new = (1.0 - ms_dt) * z + ms_dt * jnp.tanh(g_y)
    tz = jnp.dot(z_new, wz_ref[...], preferred_element_type=jnp.float32) + bz_ref[...]
    y_new = (1.0 - ms_dt_bar) * y + ms_dt_bar * jnp.tanh(tz + i_z)

    # Classifier feedback (pre-noise y) -> input of the next substep of this t.
    xy_scr[:, :NP] = (jnp.dot(y_new, wc_ref[...],
                              preferred_element_type=jnp.float32) + bc_ref[...])

    # Noise injection: noise_ref already holds coeff*delta*tanh(stoch_linear(randn)).
    nz = noise_ref[0]
    y_carry = y_new + nz[:, :H]
    z_carry = z_new + nz[:, H:]

    y_scr[...] = y_carry
    z_scr[...] = z_carry
    # Output block for timestep t is flushed to HBM only when t changes, so the
    # last substep's write is what lands in y_all[t].
    y_out_ref[0] = y_carry


def lem_fused(params_f, inputs_pad, noise_add, deltas, t_idx, first_flag,
              *, nhid, ninp_pad):
    S = deltas.shape[0]
    T, B, NP = inputs_pad.shape
    H = nhid
    kernel = functools.partial(_lem_fused_kernel, nhid=H, ninp_pad=NP)

    def wspec(shape):  # VMEM-resident weight/bias: constant block index -> no re-DMA
        return pl.BlockSpec(shape, lambda s, t, f, _n=len(shape): (0,) * _n)

    grid_spec = pltpu.PrefetchScalarGridSpec(
        num_scalar_prefetch=2,
        grid=(S,),
        in_specs=[
            pl.BlockSpec(memory_space=pltpu.SMEM),                    # deltas
            pl.BlockSpec((1, B, NP), lambda s, t, f: (t[s], 0, 0)),   # inputs[t]
            pl.BlockSpec((1, B, 2 * H), lambda s, t, f: (s, 0, 0)),   # noise[s]
            wspec((NP + H, 4 * H)),                                   # w_xy
            wspec((B, 4 * H)),                                        # b_xy
            wspec((H, H)),                                            # wz
            wspec((B, H)),                                            # bz
            wspec((H, NP)),                                           # wc (padded)
            wspec((B, NP)),                                           # bc (padded)
        ],
        out_specs=pl.BlockSpec((1, B, H), lambda s, t, f: (t[s], 0, 0)),
        scratch_shapes=[
            pltpu.VMEM((B, H), jnp.float32),        # y carry
            pltpu.VMEM((B, H), jnp.float32),        # z carry
            pltpu.VMEM((B, NP + H), jnp.float32),   # [x_feedback | y] matmul operand
        ],
    )
    return pl.pallas_call(
        kernel,
        out_shape=jax.ShapeDtypeStruct((T, B, H), jnp.float32),
        grid_spec=grid_spec,
        compiler_params=pltpu.CompilerParams(dimension_semantics=("arbitrary",)),
    )(t_idx, first_flag, deltas, inputs_pad, noise_add,
      params_f["w_xy"], params_f["b_xy"], params_f["wz"], params_f["bz"],
      params_f["wc"], params_f["bc"])


# ---------------------------------------------------------------------------
# Plain linear (+ optional tanh) kernel: noise precompute & final classifier.
# ---------------------------------------------------------------------------
def _linear_kernel(x_ref, w_ref, b_ref, o_ref, *, tanh):
    out = jnp.dot(x_ref[...], w_ref[...],
                  preferred_element_type=jnp.float32) + b_ref[...]
    if tanh:
        out = jnp.tanh(out)
    o_ref[...] = out


def linear(x, w, b, *, tanh=False):
    M, N = x.shape[0], w.shape[1]
    vmem = pl.BlockSpec(memory_space=pltpu.VMEM)
    return pl.pallas_call(
        functools.partial(_linear_kernel, tanh=tanh),
        out_shape=jax.ShapeDtypeStruct((M, N), jnp.float32),
        in_specs=[vmem, vmem, vmem],
        out_specs=vmem,
    )(x, w, b)


# ---------------------------------------------------------------------------
# Forward wrapper (one-time layout plumbing + three pallas calls, jitted)
# ---------------------------------------------------------------------------
def _pad_last(x, target):
    pad = target - x.shape[-1]
    if pad == 0:
        return x
    return jnp.pad(x, [(0, 0)] * (x.ndim - 1) + [(0, pad)])


def _pad_rows(x, mult=8):
    r = x.shape[0]
    rp = _round_up(r, mult)
    if rp == r:
        return x
    return jnp.pad(x, ((0, rp - r), (0, 0)))


@functools.partial(jax.jit, static_argnames=("nhid", "ninp", "nout", "ycoeff", "zcoeff"))
def lemode_forward(params, inputs, deltas, t_idx, first_flag, noise_raw, *,
                   nhid, ninp, nout, ycoeff=1.0, zcoeff=1.0):
    T, B, _ = inputs.shape
    H = nhid
    S = deltas.shape[0]
    NP = _round_up(max(ninp, nout), LANE)   # lane-padded input / classifier width

    # ---- one-time parameter layout plumbing (lane padding + matmul fusion) ----
    wh, bh = params["wh"], params["bh"]                       # (H,3H), (1,3H)
    wh4 = jnp.concatenate([wh[:, 0:H], wh[:, H:2 * H],
                           jnp.zeros((H, H), jnp.float32), wh[:, 2 * H:3 * H]], axis=1)
    bh4 = jnp.concatenate([bh[:, 0:H], bh[:, H:2 * H],
                           jnp.zeros((1, H), jnp.float32), bh[:, 2 * H:3 * H]], axis=1)
    wi_pad = jnp.zeros((NP, 4 * H), jnp.float32).at[:ninp].set(params["wi"])
    w_xy = jnp.concatenate([wi_pad, wh4], axis=0)             # (NP+H, 4H)
    b_xy = jnp.broadcast_to(params["bi"] + bh4, (B, 4 * H))
    wc_pad = jnp.zeros((H, NP), jnp.float32).at[:, :nout].set(params["wc"])
    bc_pad = jnp.zeros((1, NP), jnp.float32).at[:, :nout].set(params["bc"])
    params_f = {
        "w_xy": w_xy, "b_xy": b_xy,
        "wz": params["wz"], "bz": jnp.broadcast_to(params["bz"], (B, H)),
        "wc": wc_pad, "bc": jnp.broadcast_to(bc_pad, (B, NP)),
    }

    # ---- precompute the whole stochastic path with ONE batched matmul ----
    # stoch[s] = tanh(stoch_linear(randn_s)); shared across the batch, scaled
    # by coeff * delta[s] (same semantics as the reference implementation).
    stoch = linear(_pad_rows(noise_raw), params["ws"], params["bs"], tanh=True)[:S]
    d = deltas[:, None]
    noise_add = jnp.concatenate([ycoeff * d * stoch[:, :H],
                                 zcoeff * d * stoch[:, H:]], axis=1)
    noise_add = jnp.broadcast_to(noise_add[:, None, :], (S, B, 2 * H))

    inputs_pad = _pad_last(inputs, NP)                        # (T, B, NP)

    # ---- single fused recurrent kernel over all substeps ----
    y_all = lem_fused(params_f, inputs_pad, noise_add, deltas, t_idx, first_flag,
                      nhid=H, ninp_pad=NP)                    # (T, B, H)

    # ---- final classifier over the stacked post-noise hidden states ----
    flat = _pad_rows(y_all.reshape(T * B, H))
    out = linear(flat, wc_pad, bc_pad)[:T * B, :nout]
    return out.reshape(T, B, nout)


# ---------------------------------------------------------------------------
# Deterministic parameter initialization (mirrors nn.Module shapes)
# ---------------------------------------------------------------------------
def init_params(key, ninp, nhid, nout):
    std_cell = 1.0 / math.sqrt(nhid)
    std_stoch = 1.0 / math.sqrt(2 * nhid)
    keys = jax.random.split(key, 10)

    def uni(k, shape, s):
        return jax.random.uniform(k, shape, jnp.float32, minval=-s, maxval=s)

    # weights stored transposed: (in_features, out_features) -> x @ W + b
    return {
        "wi": uni(keys[0], (ninp, 4 * nhid), std_cell),
        "bi": uni(keys[1], (1, 4 * nhid), std_cell),
        "wh": uni(keys[2], (nhid, 3 * nhid), std_cell),
        "bh": uni(keys[3], (1, 3 * nhid), std_cell),
        "wz": uni(keys[4], (nhid, nhid), std_cell),
        "bz": uni(keys[5], (1, nhid), std_cell),
        "wc": jax.random.normal(keys[6], (nhid, nout), jnp.float32)
              * math.sqrt(2.0 / nhid),
        "bc": uni(keys[7], (1, nout), std_cell),
        "ws": uni(keys[8], (2 * nhid, 2 * nhid), std_stoch),
        "bs": uni(keys[9], (1, 2 * nhid), std_stoch),
    }


if __name__ == "__main__":
    # nout must equal ninp: inside the inner loop, classifier(y) is fed back
    # into inp2hid when divider > 1.
    T, B, NINP, NHID, NOUT = 4, 8, 16, 128, 16
    assert NOUT == NINP
    LIMIT = 0.1

    key = jax.random.PRNGKey(0)
    k_param, k_inp, k_noise = jax.random.split(key, 3)

    params = init_params(k_param, NINP, NHID, NOUT)
    inputs = jax.random.normal(k_inp, (T, B, NINP), dtype=jnp.float32)

    # dt per time-step (built in-script => static substep schedule)
    # TODO(synk): in the original script dt comes from data; here it is fixed.
    dt_vals = [0.08, 0.25, 0.12, 0.30]
    deltas, t_idx, first_flag = [], [], []
    for t, dt in enumerate(dt_vals):
        divider = math.ceil(dt / LIMIT)
        d = dt / divider
        assert d <= LIMIT
        for k in range(divider):
            deltas.append(d)
            t_idx.append(t)
            first_flag.append(1 if k == 0 else 0)
    S = len(deltas)

    noise_raw = jax.random.normal(k_noise, (S, 2 * NHID), dtype=jnp.float32)

    out = lemode_forward(params, inputs,
                         jnp.asarray(deltas, jnp.float32),
                         jnp.asarray(t_idx, jnp.int32),
                         jnp.asarray(first_flag, jnp.int32),
                         noise_raw,
                         nhid=NHID, ninp=NINP, nout=NOUT,
                         ycoeff=1.0, zcoeff=1.0)
    out = jax.block_until_ready(out)
    assert out.shape == (T, B, NOUT)
    print("KERNEL_OK")
</pallas_src>

<mosaic_0001>
module attributes {stable_mosaic.version = 11 : i64} {
  func.func @_linear_kernel(%arg0: memref<16x256xf32, #tpu.memory_space<vmem>>, %arg1: memref<256x256xf32, #tpu.memory_space<vmem>>, %arg2: memref<1x256xf32, #tpu.memory_space<vmem>>, %arg3: memref<16x256xf32, #tpu.memory_space<vmem>>) attributes {dimension_semantics = [], scalar_prefetch = 0 : i64, scratch_operands = 0 : i64, tpu.core_type = #tpu.core_type<tc>} {
    %c0 = arith.constant 0 : index
    %c0_0 = arith.constant 0 : index
    %0 = vector.load %arg0[%c0, %c0_0] : memref<16x256xf32, #tpu.memory_space<vmem>>, vector<16x256xf32>
    %c0_1 = arith.constant 0 : index
    %c0_2 = arith.constant 0 : index
    %1 = vector.load %arg1[%c0_1, %c0_2] : memref<256x256xf32, #tpu.memory_space<vmem>>, vector<256x256xf32>
    %cst = arith.constant dense<0.000000e+00> : vector<16x256xf32>
    %2 = tpu.matmul %0, %1, %cst {dimension_numbers = #tpu.dot_dimension_numbers<[1], [0], [0], [1], [0, 0, 1, 1], [], []>} : vector<16x256xf32>, vector<256x256xf32>, vector<16x256xf32> -> vector<16x256xf32>
    %c0_3 = arith.constant 0 : index
    %c0_4 = arith.constant 0 : index
    %3 = vector.load %arg2[%c0_3, %c0_4] : memref<1x256xf32, #tpu.memory_space<vmem>>, vector<1x256xf32>
    %4 = vector.broadcast %3 : vector<1x256xf32> to vector<16x256xf32>
    %5 = arith.addf %2, %4 : vector<16x256xf32>
    %6 = math.tanh %5 : vector<16x256xf32>
    %c0_5 = arith.constant 0 : index
    %c0_6 = arith.constant 0 : index
    %7 = vector.load %arg3[%c0_5, %c0_6] : memref<16x256xf32, #tpu.memory_space<vmem>>, vector<16x256xf32>
    tpu.vector_store %arg3[%c0_5, %c0_6], %6 {strides = array<i32>} : memref<16x256xf32, #tpu.memory_space<vmem>>, vector<16x256xf32>,
    return
  }
}

module attributes {stable_mosaic.version = 11 : i64} {
  func.func @_linear_kernel(%arg0: memref<32x128xf32, #tpu.memory_space<vmem>>, %arg1: memref<128x128xf32, #tpu.memory_space<vmem>>, %arg2: memref<1x128xf32, #tpu.memory_space<vmem>>, %arg3: memref<32x128xf32, #tpu.memory_space<vmem>>) attributes {dimension_semantics = [], scalar_prefetch = 0 : i64, scratch_operands = 0 : i64, tpu.core_type = #tpu.core_type<tc>} {
    %c0 = arith.constant 0 : index
    %c0_0 = arith.constant 0 : index
    %0 = vector.load %arg0[%c0, %c0_0] : memref<32x128xf32, #tpu.memory_space<vmem>>, vector<32x128xf32>
    %c0_1 = arith.constant 0 : index
    %c0_2 = arith.constant 0 : index
    %1 = vector.load %arg1[%c0_1, %c0_2] : memref<128x128xf32, #tpu.memory_space<vmem>>, vector<128x128xf32>
    %cst = arith.constant dense<0.000000e+00> : vector<32x128xf32>
    %2 = tpu.matmul %0, %1, %cst {dimension_numbers = #tpu.dot_dimension_numbers<[1], [0], [0], [1], [0, 0, 1, 1], [], []>} : vector<32x128xf32>, vector<128x128xf32>, vector<32x128xf32> -> vector<32x128xf32>
    %c0_3 = arith.constant 0 : index
    %c0_4 = arith.constant 0 : index
    %3 = vector.load %arg2[%c0_3, %c0_4] : memref<1x128xf32, #tpu.memory_space<vmem>>, vector<1x128xf32>
    %4 = vector.broadcast %3 : vector<1x128xf32> to vector<32x128xf32>
    %5 = arith.addf %2, %4 : vector<32x128xf32>
    %c0_5 = arith.constant 0 : index
    %c0_6 = arith.constant 0 : index
    %6 = vector.load %arg3[%c0_5, %c0_6] : memref<32x128xf32, #tpu.memory_space<vmem>>, vector<32x128xf32>
    tpu.vector_store %arg3[%c0_5, %c0_6], %5 {strides = array<i32>} : memref<32x128xf32, #tpu.memory_space<vmem>>, vector<32x128xf32>,
    return
  }
}

module attributes {stable_mosaic.version = 11 : i64} {
  func.func @_lem_fused_kernel(%arg0: i32, %arg1: memref<9xi32, #tpu.memory_space<smem>>, %arg2: memref<9xi32, #tpu.memory_space<smem>>, %arg3: memref<9xf32, #tpu.memory_space<smem>>, %arg4: memref<1x8x128xf32, #tpu.memory_space<vmem>>, %arg5: memref<1x8x256xf32, #tpu.memory_space<vmem>>, %arg6: memref<256x512xf32, #tpu.memory_space<vmem>>, %arg7: memref<8x512xf32, #tpu.memory_space<vmem>>, %arg8: memref<128x128xf32, #tpu.memory_space<vmem>>, %arg9: memref<8x128xf32, #tpu.memory_space<vmem>>, %arg10: memref<128x128xf32, #tpu.memory_space<vmem>>, %arg11: memref<8x128xf32, #tpu.memory_space<vmem>>, %arg12: memref<1x8x128xf32, #tpu.memory_space<vmem>>, %arg13: memref<8x128xf32, #tpu.memory_space<vmem>>, %arg14: memref<8x128xf32, #tpu.memory_space<vmem>>, %arg15: memref<8x256xf32, #tpu.memory_space<vmem>>) attributes {dimension_semantics = [#tpu.dimension_semantics<arbitrary>], iteration_bounds = array<i64: 9>, scalar_prefetch = 2 : i64, scratch_operands = 3 : i64, tpu.core_type = #tpu.core_type<tc>, window_params = [{transform_indices = @transform_0, window_bounds = array<i64: 9>}, {transform_indices = @transform_1, window_bounds = array<i64: 1, 8, 128>}, {transform_indices = @transform_2, window_bounds = array<i64: 1, 8, 256>}, {pipeline_mode = #tpu.pipeline_mode<synchronous>, transform_indices = @transform_3, window_bounds = array<i64: 256, 512>}, {pipeline_mode = #tpu.pipeline_mode<synchronous>, transform_indices = @transform_4, window_bounds = array<i64: 8, 512>}, {pipeline_mode = #tpu.pipeline_mode<synchronous>, transform_indices = @transform_5, window_bounds = array<i64: 128, 128>}, {pipeline_mode = #tpu.pipeline_mode<synchronous>, transform_indices = @transform_6, window_bounds = array<i64: 8, 128>}, {pipeline_mode = #tpu.pipeline_mode<synchronous>, transform_indices = @transform_7, window_bounds = array<i64: 128, 128>}, {pipeline_mode = #tpu.pipeline_mode<synchronous>, transform_indices = @transform_8, window_bounds = array<i64: 8, 128>}, {transform_indices = @transform_9, window_bounds = array<i64: 1, 8, 128>}]} {
    %0 = arith.index_cast %arg0 : i32 to index
    %1 = memref.load %arg3[%0] : memref<9xf32, #tpu.memory_space<smem>>
    %2 = arith.index_cast %arg0 : i32 to index
    %3 = memref.load %arg2[%2] : memref<9xi32, #tpu.memory_space<smem>>
    %c0_i32 = arith.constant 0 : i32
    %4 = arith.cmpi eq, %arg0, %c0_i32 : i32
    %5 = arith.extui %4 : i1 to i32
    %c0_i32_0 = arith.constant 0 : i32
    %6 = arith.cmpi ne, %5, %c0_i32_0 : i32
    scf.if %6 {
      %cst_38 = arith.constant 0.000000e+00 : f32
      %69 = vector.broadcast %cst_38 : f32 to vector<8x128xf32>
      %c0_39 = arith.constant 0 : index
      %c0_40 = arith.constant 0 : index
      %70 = vector.load %arg13[%c0_39, %c0_40] : memref<8x128xf32, #tpu.memory_space<vmem>>, vector<8x128xf32>
      tpu.vector_store %arg13[%c0_39, %c0_40], %69 {strides = array<i32>} : memref<8x128xf32, #tpu.memory_space<vmem>>, vector<8x128xf32>,
      %cst_41 = arith.constant 0.000000e+00 : f32
      %71 = vector.broadcast %cst_41 : f32 to vector<8x128xf32>
      %c0_42 = arith.constant 0 : index
      %c0_43 = arith.constant 0 : index
      %72 = vector.load %arg14[%c0_42, %c0_43] : memref<8x128xf32, #tpu.memory_space<vmem>>, vector<8x128xf32>
      tpu.vector_store %arg14[%c0_42, %c0_43], %71 {strides = array<i32>} : memref<8x128xf32, #tpu.memory_space<vmem>>, vector<8x128xf32>,
    } else {
    }
    %c1_i32 = arith.constant 1 : i32
    %7 = arith.cmpi eq, %3, %c1_i32 : i32
    %8 = arith.extui %7 : i1 to i32
    %c0_i32_1 = arith.constant 0 : i32
    %9 = arith.cmpi ne, %8, %c0_i32_1 : i32
    scf.if %9 {
      %c0_38 = arith.constant 0 : index
      %c0_39 = arith.constant 0 : index
      %c0_40 = arith.constant 0 : index
      %69 = vector.load %arg4[%c0_38, %c0_39, %c0_40] : memref<1x8x128xf32, #tpu.memory_space<vmem>>, vector<1x8x128xf32>
      %70 = vector.shape_cast %69 : vector<1x8x128xf32> to vector<8x128xf32>
      %c0_41 = arith.constant 0 : index
      %c0_42 = arith.constant 0 : index
      %71 = vector.load %arg15[%c0_41, %c0_42] : memref<8x256xf32, #tpu.memory_space<vmem>>, vector<8x128xf32>
      tpu.vector_store %arg15[%c0_41, %c0_42], %70 {strides = array<i32>} : memref<8x256xf32, #tpu.memory_space<vmem>>, vector<8x128xf32>,
    } else {
    }
    %c0 = arith.constant 0 : index
    %c0_2 = arith.constant 0 : index
    %10 = vector.load %arg13[%c0, %c0_2] : memref<8x128xf32, #tpu.memory_space<vmem>>, vector<8x128xf32>
    %c0_3 = arith.constant 0 : index
    %c0_4 = arith.constant 0 : index
    %11 = vector.load %arg14[%c0_3, %c0_4] : memref<8x128xf32, #tpu.memory_space<vmem>>, vector<8x128xf32>
    %c0_5 = arith.constant 0 : index
    %c128 = arith.constant 128 : index
    %12 = vector.load %arg15[%c0_5, %c128] : memref<8x256xf32, #tpu.memory_space<vmem>>, vector<8x128xf32>
    tpu.vector_store %arg15[%c0_5, %c128], %10 {strides = array<i32>} : memref<8x256xf32, #tpu.memory_space<vmem>>, vector<8x128xf32>,
    %c0_6 = arith.constant 0 : index
    %c0_7 = arith.constant 0 : index
    %13 = vector.load %arg15[%c0_6, %c0_7] : memref<8x256xf32, #tpu.memory_space<vmem>>, vector<8x256xf32>
    %c0_8 = arith.constant 0 : index
    %c0_9 = arith.constant 0 : index
    %14 = vector.load %arg6[%c0_8, %c0_9] : memref<256x512xf32, #tpu.memory_space<vmem>>, vector<256x512xf32>
    %cst = arith.constant dense<0.000000e+00> : vector<8x512xf32>
    %15 = tpu.matmul %13, %14, %cst {dimension_numbers = #tpu.dot_dimension_numbers<[1], [0], [0], [1], [0, 0, 1, 1], [], []>} : vector<8x256xf32>, vector<256x512xf32>, vector<8x512xf32> -> vector<8x512xf32>
    %c0_10 = arith.constant 0 : index
    %c0_11 = arith.constant 0 : index
    %16 = vector.load %arg7[%c0_10, %c0_11] : memref<8x512xf32, #tpu.memory_space<vmem>>, vector<8x512xf32>
    %17 = arith.addf %15, %16 : vector<8x512xf32>
    %18 = vector.extract_strided_slice %17 {offsets = [0, 0], sizes = [8, 128], strides = [1, 1]} : vector<8x512xf32> to vector<8x128xf32>
    %19 = vector.extract_strided_slice %17 {offsets = [0, 128], sizes = [8, 128], strides = [1, 1]} : vector<8x512xf32> to vector<8x128xf32>
    %20 = vector.extract_strided_slice %17 {offsets = [0, 256], sizes = [8, 128], strides = [1, 1]} : vector<8x512xf32> to vector<8x128xf32>
    %21 = vector.extract_strided_slice %17 {offsets = [0, 384], sizes = [8, 128], strides = [1, 1]} : vector<8x512xf32> to vector<8x128xf32>
    %22 = arith.negf %18 : vector<8x128xf32>
    %23 = math.exp %22 : vector<8x128xf32>
    %cst_12 = arith.constant 1.000000e+00 : f32
    %24 = vector.broadcast %cst_12 : f32 to vector<8x128xf32>
    %25 = arith.addf %24, %23 : vector<8x128xf32>
    %26 = arith.divf %24, %25 : vector<8x128xf32>
    %27 = vector.broadcast %1 : f32 to vector<8x128xf32>
    %28 = arith.mulf %27, %26 : vector<8x128xf32>
    %29 = arith.negf %19 : vector<8x128xf32>
    %30 = math.exp %29 : vector<8x128xf32>
    %cst_13 = arith.constant 1.000000e+00 : f32
    %31 = vector.broadcast %cst_13 : f32 to vector<8x128xf32>
    %32 = arith.addf %31, %30 : vector<8x128xf32>
    %33 = arith.divf %31, %32 : vector<8x128xf32>
    %34 = vector.broadcast %1 : f32 to vector<8x128xf32>
    %35 = arith.mulf %34, %33 : vector<8x128xf32>
    %cst_14 = arith.constant 1.000000e+00 : f32
    %36 = vector.broadcast %cst_14 : f32 to vector<8x128xf32>
    %37 = arith.subf %36, %35 : vector<8x128xf32>
    %38 = arith.mulf %37, %11 : vector<8x128xf32>
    %39 = math.tanh %21 : vector<8x128xf32>
    %40 = arith.mulf %35, %39 : vector<8x128xf32>
    %41 = arith.addf %38, %40 : vector<8x128xf32>
    %c0_15 = arith.constant 0 : index
    %c0_16 = arith.constant 0 : index
    %42 = vector.load %arg8[%c0_15, %c0_16] : memref<128x128xf32, #tpu.memory_space<vmem>>, vector<128x128xf32>
    %cst_17 = arith.constant dense<0.000000e+00> : vector<8x128xf32>
    %43 = tpu.matmul %41, %42, %cst_17 {dimension_numbers = #tpu.dot_dimension_numbers<[1], [0], [0], [1], [0, 0, 1, 1], [], []>} : vector<8x128xf32>, vector<128x128xf32>, vector<8x128xf32> -> vector<8x128xf32>
    %c0_18 = arith.constant 0 : index
    %c0_19 = arith.constant 0 : index
    %44 = vector.load %arg9[%c0_18, %c0_19] : memref<8x128xf32, #tpu.memory_space<vmem>>, vector<8x128xf32>
    %45 = arith.addf %43, %44 : vector<8x128xf32>
    %cst_20 = arith.constant 1.000000e+00 : f32
    %46 = vector.broadcast %cst_20 : f32 to vector<8x128xf32>
    %47 = arith.subf %46, %28 : vector<8x128xf32>
    %48 = arith.mulf %47, %10 : vector<8x128xf32>
    %49 = arith.addf %45, %20 : vector<8x128xf32>
    %50 = math.tanh %49 : vector<8x128xf32>
    %51 = arith.mulf %28, %50 : vector<8x128xf32>
    %52 = arith.addf %48, %51 : vector<8x128xf32>
    %c0_21 = arith.constant 0 : index
    %c0_22 = arith.constant 0 : index
    %53 = vector.load %arg10[%c0_21, %c0_22] : memref<128x128xf32, #tpu.memory_space<vmem>>, vector<128x128xf32>
    %cst_23 = arith.constant dense<0.000000e+00> : vector<8x128xf32>
    %54 = tpu.matmul %52, %53, %cst_23 {dimension_numbers = #tpu.dot_dimension_numbers<[1], [0], [0], [1], [0, 0, 1, 1], [], []>} : vector<8x128xf32>, vector<128x128xf32>, vector<8x128xf32> -> vector<8x128xf32>
    %c0_24 = arith.constant 0 : index
    %c0_25 = arith.constant 0 : index
    %55 = vector.load %arg11[%c0_24, %c0_25] : memref<8x128xf32, #tpu.memory_space<vmem>>, vector<8x128xf32>
    %56 = arith.addf %54, %55 : vector<8x128xf32>
    %c0_26 = arith.constant 0 : index
    %c0_27 = arith.constant 0 : index
    %57 = vector.load %arg15[%c0_26, %c0_27] : memref<8x256xf32, #tpu.memory_space<vmem>>, vector<8x128xf32>
    tpu.vector_store %arg15[%c0_26, %c0_27], %56 {strides = array<i32>} : memref<8x256xf32, #tpu.memory_space<vmem>>, vector<8x128xf32>,
    %c0_28 = arith.constant 0 : index
    %c0_29 = arith.constant 0 : index
    %c0_30 = arith.constant 0 : index
    %58 = vector.load %arg5[%c0_28, %c0_29, %c0_30] : memref<1x8x256xf32, #tpu.memory_space<vmem>>, vector<1x8x256xf32>
    %59 = vector.shape_cast %58 : vector<1x8x256xf32> to vector<8x256xf32>
    %60 = vector.extract_strided_slice %59 {offsets = [0, 0], sizes = [8, 128], strides = [1, 1]} : vector<8x256xf32> to vector<8x128xf32>
    %61 = arith.addf %52, %60 : vector<8x128xf32>
    %62 = vector.extract_strided_slice %59 {offsets = [0, 128], sizes = [8, 128], strides = [1, 1]} : vector<8x256xf32> to vector<8x128xf32>
    %63 = arith.addf %41, %62 : vector<8x128xf32>
    %c0_31 = arith.constant 0 : index
    %c0_32 = arith.constant 0 : index
    %64 = vector.load %arg13[%c0_31, %c0_32] : memref<8x128xf32, #tpu.memory_space<vmem>>, vector<8x128xf32>
    tpu.vector_store %arg13[%c0_31, %c0_32], %61 {strides = array<i32>} : memref<8x128xf32, #tpu.memory_space<vmem>>, vector<8x128xf32>,
    %c0_33 = arith.constant 0 : index
    %c0_34 = arith.constant 0 : index
    %65 = vector.load %arg14[%c0_33, %c0_34] : memref<8x128xf32, #tpu.memory_space<vmem>>, vector<8x128xf32>
    tpu.vector_store %arg14[%c0_33, %c0_34], %63 {strides = array<i32>} : memref<8x128xf32, #tpu.memory_space<vmem>>, vector<8x128xf32>,
    %c0_35 = arith.constant 0 : index
    %c0_36 = arith.constant 0 : index
    %c0_37 = arith.constant 0 : index
    %66 = vector.load %arg12[%c0_35, %c0_36, %c0_37] : memref<1x8x128xf32, #tpu.memory_space<vmem>>, vector<1x8x128xf32>
    %67 = vector.shape_cast %66 : vector<1x8x128xf32> to vector<8x128xf32>
    %68 = vector.shape_cast %61 : vector<8x128xf32> to vector<1x8x128xf32>
    tpu.vector_store %arg12[%c0_35, %c0_36, %c0_37], %68 {strides = array<i32>} : memref<1x8x128xf32, #tpu.memory_space<vmem>>, vector<1x8x128xf32>,
    return
  }
  func.func @transform_0(%arg0: i32, %arg1: memref<9xi32, #tpu.memory_space<smem>>, %arg2: memref<9xi32, #tpu.memory_space<smem>>) -> i32 {
    %c0_i32 = arith.constant 0 : i32
    %c0_i32_0 = arith.constant 0 : i32
    return %c0_i32 : i32
  }
  func.func @transform_1(%arg0: i32, %arg1: memref<9xi32, #tpu.memory_space<smem>>, %arg2: memref<9xi32, #tpu.memory_space<smem>>) -> (i32, i32, i32) {
    %0 = arith.index_cast %arg0 : i32 to index
    %1 = memref.load %arg1[%0] : memref<9xi32, #tpu.memory_space<smem>>
    %c0_i32 = arith.constant 0 : i32
    %c0_i32_0 = arith.constant 0 : i32
    %c0_i32_1 = arith.constant 0 : i32
    return %1, %c0_i32, %c0_i32_0 : i32, i32, i32
  }
  func.func @transform_2(%arg0: i32, %arg1: memref<9xi32, #tpu.memory_space<smem>>, %arg2: memref<9xi32, #tpu.memory_space<smem>>) -> (i32, i32, i32) {
    %c0_i32 = arith.constant 0 : i32
    %c0_i32_0 = arith.constant 0 : i32
    %c0_i32_1 = arith.constant 0 : i32
    return %arg0, %c0_i32, %c0_i32_0 : i32, i32, i32
  }
  func.func @transform_3(%arg0: i32, %arg1: memref<9xi32, #tpu.memory_space<smem>>, %arg2: memref<9xi32, #tpu.memory_space<smem>>) -> (i32, i32) {
    %c0_i32 = arith.constant 0 : i32
    %c0_i32_0 = arith.constant 0 : i32
    %c0_i32_1 = arith.constant 0 : i32
    return %c0_i32, %c0_i32_0 : i32, i32
  }
  func.func @transform_4(%arg0: i32, %arg1: memref<9xi32, #tpu.memory_space<smem>>, %arg2: memref<9xi32, #tpu.memory_space<smem>>) -> (i32, i32) {
    %c0_i32 = arith.constant 0 : i32
    %c0_i32_0 = arith.constant 0 : i32
    %c0_i32_1 = arith.constant 0 : i32
    return %c0_i32, %c0_i32_0 : i32, i32
  }
  func.func @transform_5(%arg0: i32, %arg1: memref<9xi32, #tpu.memory_space<smem>>, %arg2: memref<9xi32, #tpu.memory_space<smem>>) -> (i32, i32) {
    %c0_i32 = arith.constant 0 : i32
    %c0_i32_0 = arith.constant 0 : i32
    %c0_i32_1 = arith.constant 0 : i32
    return %c0_i32, %c0_i32_0 : i32, i32
  }
  func.func @transform_6(%arg0: i32, %arg1: memref<9xi32, #tpu.memory_space<smem>>, %arg2: memref<9xi32, #tpu.memory_space<smem>>) -> (i32, i32) {
    %c0_i32 = arith.constant 0 : i32
    %c0_i32_0 = arith.constant 0 : i32
    %c0_i32_1 = arith.constant 0 : i32
    return %c0_i32, %c0_i32_0 : i32, i32
  }
  func.func @transform_7(%arg0: i32, %arg1: memref<9xi32, #tpu.memory_space<smem>>, %arg2: memref<9xi32, #tpu.memory_space<smem>>) -> (i32, i32) {
    %c0_i32 = arith.constant 0 : i32
    %c0_i32_0 = arith.constant 0 : i32
    %c0_i32_1 = arith.constant 0 : i32
    return %c0_i32, %c0_i32_0 : i32, i32
  }
  func.func @transform_8(%arg0: i32, %arg1: memref<9xi32, #tpu.memory_space<smem>>, %arg2: memref<9xi32, #tpu.memory_space<smem>>) -> (i32, i32) {
    %c0_i32 = arith.constant 0 : i32
    %c0_i32_0 = arith.constant 0 : i32
    %c0_i32_1 = arith.constant 0 : i32
    return %c0_i32, %c0_i32_0 : i32, i32
  }
  func.func @transform_9(%arg0: i32, %arg1: memref<9xi32, #tpu.memory_space<smem>>, %arg2: memref<9xi32, #tpu.memory_space<smem>>) -> (i32, i32, i32) {
    %0 = arith.index_cast %arg0 : i32 to index
    %1 = memref.load %arg1[%0] : memref<9xi32, #tpu.memory_space<smem>>
    %c0_i32 = arith.constant 0 : i32
    %c0_i32_0 = arith.constant 0 : i32
    %c0_i32_1 = arith.constant 0 : i32
    return %1, %c0_i32, %c0_i32_0 : i32, i32, i32
  }
}

</mosaic_0001>

<bundles_post_ra>
// kernel: lemode_forward.3
= control target key start
LH: loop header
LB: loop body
LE: loop exit
PB: predicated region body
PF: predicated region fallthrough
CT: control target
= control target key end

     0   :  { %8 = vsyncpa [#allocation3], 0  ;;  %s246_s15 = smov [#allocation2]   ;;  %s247_s17 = smov 256   ;;  %s299_s0 = inlined_call_operand.vmem [shape: f32[16,256], index: 0, kind: input, shape index: {}]   ;;  %s300_s1 = inlined_call_operand.hbm [shape: f32[256,256], index: 1, kind: input, shape index: {}]   ;;  %s301_s2 = inlined_call_operand.vmem [shape: f32[1,256], index: 2, kind: input, shape index: {}]   ;;  %s302_s3 = inlined_call_operand.vmem [shape: f32[16,256], index: 3, kind: output, shape index: {}]  }
   0x1   :  { %s15_s14 = sshll.u32 %s300_s1, 4  ;;  %s17_s16 = sshll.u32 %s246_s15, 4  ;;  %s16_s14 = int_to_ptr.hbm [resolvable:$true] %s15_s14  ;;  %s18_s16 = int_to_ptr.vmem [resolvable:$true] %s17_s16 }
   0x2   :  { %s248_s18 = smov 16  }
   0x3   :  { %23 = dma.hbm_to_vmem [thread:$0]  %s16_s14, 8192, %s18_s16, [#allocation3], %s247_s17, %s247_s17, %s248_s18  }
   0x4   :  { %244 = dma.done.wait [#allocation3], 8192  }
   0x5   :  { %245 = vsyncadd [#allocation3], 4294959104  ;;  %v65_v0 = vld [vmem:[#allocation2 + $0xf8] sm:$0xff]  ;;  %v63_v1 = vld [vmem:[#allocation2 + $0xe8] sm:$0xff] }
   0x6   :  { %v97_v2 = vld [vmem:[#allocation2 + $0x1f8] sm:$0xff]  ;;  %150 = vmatpush.msra.mxu2 %v65_v0  ;;  %v95_v3 = vld [vmem:[#allocation2 + $0x1e8] sm:$0xff]  ;;  %v64_v4 = vld [vmem:[#allocation2 + $0xf0] sm:$0xff] }
   0x7   :  { %173 = vmatpush.msra.mxu3 %v97_v2  ;;  %v61_v5 = vld [vmem:[#allocation2 + $0xd8] sm:$0xff]  ;;  %104 = vmatpush.msra.mxu0 %v64_v4  ;;  %v62_v7 = vld [vmem:[#allocation2 + $0xe0] sm:$0xff]  ;;  %v59_v8 = vld [vmem:[#allocation2 + $0xc8] sm:$0xff] }
   0x8   :  { %v93_v6 = vld [vmem:[#allocation2 + $0x1d8] sm:$0xff]  ;;  %151 = vmatpush.msra.mxu2 %v63_v1  ;;  %v96_v9 = vld [vmem:[#allocation2 + $0x1f0] sm:$0xff]  ;;  %v91_v10 = vld [vmem:[#allocation2 + $0x1c8] sm:$0xff] }
   0x9   :  { %174 = vmatpush.msra.mxu3 %v95_v3  ;;  %105 = vmatpush.msra.mxu0 %v62_v7  ;;  %v60_v11 = vld [vmem:[#allocation2 + $0xd0] sm:$0xff]  ;;  %v94_v12 = vld [vmem:[#allocation2 + $0x1e0] sm:$0xff]  ;;  %v57_v15 = vld [vmem:[#allocation2 + $0xb8] sm:$0xff] }
   0xa   :  { %127 = vmatpush.msra.mxu1 %v96_v9  ;;  %152 = vmatpush.msra.mxu2 %v61_v5  ;;  %v58_v13 = vld [vmem:[#allocation2 + $0xc0] sm:$0xff]  ;;  %v92_v14 = vld [vmem:[#allocation2 + $0x1d0] sm:$0xff]  ;;  %v89_v16 = vld [vmem:[#allocation2 + $0x1b8] sm:$0xff] }
   0xb   :  { %175 = vmatpush.msra.mxu3 %v93_v6  ;;  %106 = vmatpush.msra.mxu0 %v60_v11  ;;  %v56_v17 = vld [vmem:[#allocation2 + $0xb0] sm:$0xff]  ;;  %v90_v18 = vld [vmem:[#allocation2 + $0x1c0] sm:$0xff]  ;;  %v55_v19 = vld [vmem:[#allocation2 + $0xa8] sm:$0xff] }
   0xc   :  { %128 = vmatpush.msra.mxu1 %v94_v12  ;;  %153 = vmatpush.msra.mxu2 %v59_v8  ;;  %v87_v20 = vld [vmem:[#allocation2 + $0x1a8] sm:$0xff]  ;;  %v54_v21 = vld [vmem:[#allocation2 + $0xa0] sm:$0xff]  ;;  %v88_v22 = vld [vmem:[#allocation2 + $0x1b0] sm:$0xff] }
   0xd   :  { %176 = vmatpush.msra.mxu3 %v91_v10  ;;  %107 = vmatpush.msra.mxu0 %v58_v13  ;;  %v53_v23 = vld [vmem:[#allocation2 + $0x98] sm:$0xff]  ;;  %v52_v25 = vld [vmem:[#allocation2 + $0x90] sm:$0xff]  ;;  %v86_v26 = vld [vmem:[#allocation2 + $0x1a0] sm:$0xff] }
   0xe   :  { %129 = vmatpush.msra.mxu1 %v92_v14  ;;  %154 = vmatpush.msra.mxu2 %v57_v15  ;;  %v85_v24 = vld [vmem:[#allocation2 + $0x198] sm:$0xff]  ;;  %v51_v27 = vld [vmem:[#allocation2 + $0x88] sm:$0xff]  ;;  %v50_v29 = vld [vmem:[#allocation2 + $0x80] sm:$0xff] }
   0xf   :  { %177 = vmatpush.msra.mxu3 %v89_v16  ;;  %108 = vmatpush.msra.mxu0 %v56_v17  ;;  %v83_v28 = vld [vmem:[#allocation2 + $0x188] sm:$0xff]  ;;  %v84_v30 = vld [vmem:[#allocation2 + $0x190] sm:$0xff]  ;;  %v49_v31 = vld [vmem:[#allocation2 + $0x78] sm:$0xff] }
  0x10   :  { %130 = vmatpush.msra.mxu1 %v90_v18  ;;  %155 = vmatpush.msra.mxu2 %v55_v19  ;;  %v81_v32 = vld [vmem:[#allocation2 + $0x178] sm:$0xff]  ;;  %v48_v33 = vld [vmem:[#allocation2 + $0x70] sm:$0xff]  ;;  %v82_v34 = vld [vmem:[#allocation2 + $0x180] sm:$0xff] }
  0x11   :  { %178 = vmatpush.msra.mxu3 %v87_v20  ;;  %109 = vmatpush.msra.mxu0 %v54_v21  ;;  %v47_v35 = vld [vmem:[#allocation2 + $0x68] sm:$0xff]  ;;  %v46_v37 = vld [vmem:[#allocation2 + $0x60] sm:$0xff]  ;;  %v80_v38 = vld [vmem:[#allocation2 + $0x170] sm:$0xff] }
  0x12   :  { %131 = vmatpush.msra.mxu1 %v88_v22  ;;  %156 = vmatpush.msra.mxu2 %v53_v23  ;;  %v79_v36 = vld [vmem:[#allocation2 + $0x168] sm:$0xff]  ;;  %v45_v39 = vld [vmem:[#allocation2 + $0x58] sm:$0xff]  ;;  %v44_v41 = vld [vmem:[#allocation2 + $0x50] sm:$0xff] }
  0x13   :  { %179 = vmatpush.msra.mxu3 %v85_v24  ;;  %110 = vmatpush.msra.mxu0 %v52_v25  ;;  %v77_v40 = vld [vmem:[#allocation2 + $0x158] sm:$0xff]  ;;  %v78_v42 = vld [vmem:[#allocation2 + $0x160] sm:$0xff]  ;;  %v43_v43 = vld [vmem:[#allocation2 + $0x48] sm:$0xff] }
  0x14   :  { %132 = vmatpush.msra.mxu1 %v86_v26  ;;  %157 = vmatpush.msra.mxu2 %v51_v27  ;;  %v75_v44 = vld [vmem:[#allocation2 + $0x148] sm:$0xff]  ;;  %v42_v45 = vld [vmem:[#allocation2 + $0x40] sm:$0xff]  ;;  %v76_v46 = vld [vmem:[#allocation2 + $0x150] sm:$0xff] }
  0x15   :  { %180 = vmatpush.msra.mxu3 %v83_v28  ;;  %111 = vmatpush.msra.mxu0 %v50_v29  ;;  %v41_v47 = vld [vmem:[#allocation2 + $0x38] sm:$0xff]  ;;  %v40_v49 = vld [vmem:[#allocation2 + $0x30] sm:$0xff]  ;;  %v74_v50 = vld [vmem:[#allocation2 + $0x140] sm:$0xff] }
  0x16   :  { %133 = vmatpush.msra.mxu1 %v84_v30  ;;  %158 = vmatpush.msra.mxu2 %v49_v31  ;;  %v73_v48 = vld [vmem:[#allocation2 + $0x138] sm:$0xff]  ;;  %v39_v51 = vld [vmem:[#allocation2 + $0x28] sm:$0xff]  ;;  %v38_v53 = vld [vmem:[#allocation2 + $0x20] sm:$0xff] }
  0x17   :  { %181 = vmatpush.msra.mxu3 %v81_v32  ;;  %112 = vmatpush.msra.mxu0 %v48_v33  ;;  %v71_v52 = vld [vmem:[#allocation2 + $0x128] sm:$0xff]  ;;  %v72_v54 = vld [vmem:[#allocation2 + $0x130] sm:$0xff]  ;;  %v37_v55 = vld [vmem:[#allocation2 + $0x18] sm:$0xff] }
  0x18   :  { %134 = vmatpush.msra.mxu1 %v82_v34  ;;  %159 = vmatpush.msra.mxu2 %v47_v35  ;;  %v69_v56 = vld [vmem:[#allocation2 + $0x118] sm:$0xff]  ;;  %v36_v57 = vld [vmem:[#allocation2 + $0x10] sm:$0xff]  ;;  %v70_v58 = vld [vmem:[#allocation2 + $0x120] sm:$0xff] }
  0x19   :  { %182 = vmatpush.msra.mxu3 %v79_v36  ;;  %113 = vmatpush.msra.mxu0 %v46_v37  ;;  %v35_v59 = vld [vmem:[#allocation2 + $0x8] sm:$0xff]  ;;  %v30_v61 = vld [vmem:[%s299_s0] sm:$0xff]  ;;  %v68_v0 = vld [vmem:[#allocation2 + $0x110] sm:$0xff] }
  0x1a   :  { %135 = vmatpush.msra.mxu1 %v80_v38  ;;  %160 = vmatpush.msra.mxu2 %v45_v39  ;;  %v67_v60 = vld [vmem:[#allocation2 + $0x108] sm:$0xff]  ;;  %v34_v63 = vld [vmem:[#allocation2] sm:$0xff]  ;;  %v32_v2 = vld [vmem:[%s299_s0 + $0x10] sm:$0xff] }
  0x1b   :  { %183 = vmatpush.msra.mxu3 %v77_v40  ;;  %114 = vmatpush.msra.mxu0 %v44_v41  ;;  %v31_v62 = vld [vmem:[%s299_s0 + $0x8] sm:$0xff]  ;;  %v66_v1 = vld [vmem:[#allocation2 + $0x100] sm:$0xff]  ;;  %v33_v3 = vld [vmem:[%s299_s0 + $0x18] sm:$0xff] }
  0x1c   :  { %136 = vmatpush.msra.mxu1 %v78_v42  ;;  %161 = vmatpush.msra.mxu2 %v43_v43  ;;  %v98_v4 = vld [vmem:[%s301_s2] sm:$0x3] }
  0x1d   :  { %184 = vmatpush.msra.mxu3 %v75_v44  ;;  %115 = vmatpush.msra.mxu0 %v42_v45  ;;  %v100_v5 = vperm.slane %v98_v4, 0  ;;  %v101_v8 = vperm.slane %v98_v4, 1 }
  0x1e   :  { %137 = vmatpush.msra.mxu1 %v76_v46  ;;  %162 = vmatpush.msra.mxu2 %v41_v47 }
  0x1f   :  { %185 = vmatpush.msra.mxu3 %v73_v48  ;;  %116 = vmatpush.msra.mxu0 %v40_v49 }
  0x20   :  { %138 = vmatpush.msra.mxu1 %v74_v50  ;;  %163 = vmatpush.msra.mxu2 %v39_v51 }
  0x21   :  { %186 = vmatpush.msra.mxu3 %v71_v52  ;;  %117 = vmatpush.msra.mxu0 %v38_v53 }
  0x22   :  { %139 = vmatpush.msra.mxu1 %v72_v54  ;;  %164 = vmatpush.msra.mxu2 %v37_v55 }
  0x23   :  { %187 = vmatpush.msra.mxu3 %v69_v56  ;;  %118 = vmatpush.msra.mxu0 %v36_v57 }
  0x24   :  { %140 = vmatpush.msra.mxu1 %v70_v58  ;;  %165 = vmatpush.msra.mxu2 %v35_v59 }
  0x25   :  { %188 = vmatpush.msra.mxu3 %v67_v60  ;;  %166 = vmatmul.f32.vlgmr.msra.gmra.mxu2 %v30_v61 }
  0x26   :  { %189 = vmatmul.f32.vlgmr.msra.gmra.mxu3 %v31_v62  ;;  %119 = vmatpush.msra.mxu0 %v34_v63 }
  0x27   :  { %141 = vmatpush.msra.mxu1 %v68_v0  ;;  %120 = vmatmul.f32.vlgmr.msra.gmra.mxu0 %v30_v61 }
  0x29   :  { %142 = vmatpush.msra.mxu1 %v66_v1 }
  0x2a   :  { %143 = vmatmul.f32.vlgmr.msra.gmra.mxu1 %v31_v62 }
  0x2d   :  { %169 = vmatmul.f32.gmra.mxu2 %v32_v2 }
  0x2e   :  { %192 = vmatmul.f32.gmra.mxu3 %v33_v3 }
  0x2f   :  { %123 = vmatmul.f32.gmra.mxu0 %v32_v2 }
  0x32   :  { %146 = vmatmul.f32.gmra.mxu1 %v33_v3 }
  0xa4   :  { %v121_v6 = vpop.f32.mrf.mxu0 }
  0xa5   :  { %v122_v7 = vadd.f32 %v121_v6, %v100_v5 }
  0xa7   :  { %v144_v9 = vpop.f32.mrf.mxu1 }
  0xa8   :  { %v145_v10 = vadd.f32 %v144_v9, %v122_v7  ;;  %v167_v11 = vpop.f32.mrf.mxu2 }
  0xa9   :  { %v190_v12 = vpop.f32.mrf.mxu3  ;;  %v168_v13 = vadd.f32 %v167_v11, %v101_v8 }
  0xaa   :  { %212 = vtanh.f32 %v145_v10 }
  0xab   :  { %v191_v14 = vadd.f32 %v190_v12, %v168_v13 }
  0xac   :  { %v124_v15 = vpop.f32.mrf.mxu0 }
  0xad   :  { %214 = vtanh.f32 %v191_v14  ;;  %v125_v16 = vadd.f32 %v124_v15, %v100_v5 }
  0xaf   :  { %v147_v17 = vpop.f32.mrf.mxu1 }
  0xb0   :  { %v213_v18 = vpop.eup %212  ;;  %v148_v19 = vadd.f32 %v147_v17, %v125_v16  ;;  %v170_v20 = vpop.f32.mrf.mxu2 }
  0xb1   :  { %200 = vst [vmem:[%s302_s3] sm:$0xff] %v213_v18  ;;  %v193_v21 = vpop.f32.mrf.mxu3  ;;  %v171_v22 = vadd.f32 %v170_v20, %v101_v8 }
  0xb2   :  { %216 = vtanh.f32 %v148_v19 }
  0xb3   :  { %v215_v23 = vpop.eup %214  ;;  %v194_v24 = vadd.f32 %v193_v21, %v171_v22 }
  0xb4   :  { %201 = vst [vmem:[%s302_s3 + $0x8] sm:$0xff] %v215_v23 }
  0xb5   :  { %218 = vtanh.f32 %v194_v24 }
  0xb8   :  { %v217_v25 = vpop.eup %216 }
  0xb9   :  { %202 = vst [vmem:[%s302_s3 + $0x10] sm:$0xff] %v217_v25 }
  0xbb   :  { %v219_v26 = vpop.eup %218 }
  0xbc   :  { %203 = vst [vmem:[%s302_s3 + $0x18] sm:$0xff] %v219_v26 }
  0xbd   :  { %208 = vsyncpa [#allocation3], 1 }

// kernel: lemode_forward.5
= control target key start
LH: loop header
LB: loop body
LE: loop exit
PB: predicated region body
PF: predicated region fallthrough
CT: control target
= control target key end

     0   :  { %s219_s1 = inlined_call_operand.vmem [shape: f32[128,128], index: 1, kind: input, shape index: {}]   ;;  %s220_s2 = inlined_call_operand.vmem [shape: f32[1,128], index: 2, kind: input, shape index: {}]   ;;  %s221_s0 = inlined_call_operand.vmem [shape: f32[32,128], index: 0, kind: input, shape index: {}]   ;;  %s222_s3 = inlined_call_operand.vmem [shape: f32[32,128], index: 3, kind: output, shape index: {}]  }
   0x1   :  { %v33_v0 = vld [vmem:[%s219_s1 + $0x78] sm:$0xff]  ;;  %v32_v1 = vld [vmem:[%s219_s1 + $0x70] sm:$0xff]  ;;  %v31_v2 = vld [vmem:[%s219_s1 + $0x68] sm:$0xff] }
   0x2   :  { %76 = vmatpush.msra.mxu2 %v33_v0  ;;  %77 = vmatpush.msra.mxu3 %v33_v0  ;;  %v30_v3 = vld [vmem:[%s219_s1 + $0x60] sm:$0xff]  ;;  %v29_v4 = vld [vmem:[%s219_s1 + $0x58] sm:$0xff]  ;;  %v28_v5 = vld [vmem:[%s219_s1 + $0x50] sm:$0xff] }
   0x3   :  { %38 = vmatpush.msra.mxu0 %v33_v0  ;;  %75 = vmatpush.msra.mxu1 %v33_v0  ;;  %v27_v6 = vld [vmem:[%s219_s1 + $0x48] sm:$0xff]  ;;  %v26_v7 = vld [vmem:[%s219_s1 + $0x40] sm:$0xff]  ;;  %v25_v8 = vld [vmem:[%s219_s1 + $0x38] sm:$0xff] }
   0x4   :  { %79 = vmatpush.msra.mxu2 %v32_v1  ;;  %80 = vmatpush.msra.mxu3 %v32_v1  ;;  %v24_v9 = vld [vmem:[%s219_s1 + $0x30] sm:$0xff]  ;;  %v23_v10 = vld [vmem:[%s219_s1 + $0x28] sm:$0xff]  ;;  %v22_v11 = vld [vmem:[%s219_s1 + $0x20] sm:$0xff] }
   0x5   :  { %39 = vmatpush.msra.mxu0 %v32_v1  ;;  %78 = vmatpush.msra.mxu1 %v32_v1  ;;  %v21_v12 = vld [vmem:[%s219_s1 + $0x18] sm:$0xff]  ;;  %v20_v13 = vld [vmem:[%s219_s1 + $0x10] sm:$0xff]  ;;  %v19_v14 = vld [vmem:[%s219_s1 + $0x8] sm:$0xff] }
   0x6   :  { %82 = vmatpush.msra.mxu2 %v31_v2  ;;  %83 = vmatpush.msra.mxu3 %v31_v2  ;;  %v18_v15 = vld [vmem:[%s219_s1] sm:$0xff]  ;;  %v16_v16 = vld [vmem:[%s221_s0 + $0x10] sm:$0xff]  ;;  %v17_v17 = vld [vmem:[%s221_s0 + $0x18] sm:$0xff] }
   0x7   :  { %40 = vmatpush.msra.mxu0 %v31_v2  ;;  %81 = vmatpush.msra.mxu1 %v31_v2  ;;  %v14_v18 = vld [vmem:[%s221_s0] sm:$0xff]  ;;  %v15_v19 = vld [vmem:[%s221_s0 + $0x8] sm:$0xff] }
   0x8   :  { %85 = vmatpush.msra.mxu2 %v30_v3  ;;  %86 = vmatpush.msra.mxu3 %v30_v3  ;;  %v123_v20 = vld [vmem:[%s220_s2] ss:$0 sm:$0xff] }
   0x9   :  { %41 = vmatpush.msra.mxu0 %v30_v3  ;;  %84 = vmatpush.msra.mxu1 %v30_v3 }
   0xa   :  { %88 = vmatpush.msra.mxu2 %v29_v4  ;;  %89 = vmatpush.msra.mxu3 %v29_v4 }
   0xb   :  { %42 = vmatpush.msra.mxu0 %v29_v4  ;;  %87 = vmatpush.msra.mxu1 %v29_v4 }
   0xc   :  { %91 = vmatpush.msra.mxu2 %v28_v5  ;;  %92 = vmatpush.msra.mxu3 %v28_v5 }
   0xd   :  { %43 = vmatpush.msra.mxu0 %v28_v5  ;;  %90 = vmatpush.msra.mxu1 %v28_v5 }
   0xe   :  { %94 = vmatpush.msra.mxu2 %v27_v6  ;;  %95 = vmatpush.msra.mxu3 %v27_v6 }
   0xf   :  { %44 = vmatpush.msra.mxu0 %v27_v6  ;;  %93 = vmatpush.msra.mxu1 %v27_v6 }
  0x10   :  { %97 = vmatpush.msra.mxu2 %v26_v7  ;;  %98 = vmatpush.msra.mxu3 %v26_v7 }
  0x11   :  { %45 = vmatpush.msra.mxu0 %v26_v7  ;;  %96 = vmatpush.msra.mxu1 %v26_v7 }
  0x12   :  { %100 = vmatpush.msra.mxu2 %v25_v8  ;;  %101 = vmatpush.msra.mxu3 %v25_v8 }
  0x13   :  { %46 = vmatpush.msra.mxu0 %v25_v8  ;;  %99 = vmatpush.msra.mxu1 %v25_v8 }
  0x14   :  { %103 = vmatpush.msra.mxu2 %v24_v9  ;;  %104 = vmatpush.msra.mxu3 %v24_v9 }
  0x15   :  { %47 = vmatpush.msra.mxu0 %v24_v9  ;;  %102 = vmatpush.msra.mxu1 %v24_v9 }
  0x16   :  { %106 = vmatpush.msra.mxu2 %v23_v10  ;;  %107 = vmatpush.msra.mxu3 %v23_v10 }
  0x17   :  { %48 = vmatpush.msra.mxu0 %v23_v10  ;;  %105 = vmatpush.msra.mxu1 %v23_v10 }
  0x18   :  { %109 = vmatpush.msra.mxu2 %v22_v11  ;;  %110 = vmatpush.msra.mxu3 %v22_v11 }
  0x19   :  { %49 = vmatpush.msra.mxu0 %v22_v11  ;;  %108 = vmatpush.msra.mxu1 %v22_v11 }
  0x1a   :  { %112 = vmatpush.msra.mxu2 %v21_v12  ;;  %113 = vmatpush.msra.mxu3 %v21_v12 }
  0x1b   :  { %50 = vmatpush.msra.mxu0 %v21_v12  ;;  %111 = vmatpush.msra.mxu1 %v21_v12 }
  0x1c   :  { %115 = vmatpush.msra.mxu2 %v20_v13  ;;  %116 = vmatpush.msra.mxu3 %v20_v13 }
  0x1d   :  { %51 = vmatpush.msra.mxu0 %v20_v13  ;;  %114 = vmatpush.msra.mxu1 %v20_v13 }
  0x1e   :  { %118 = vmatpush.msra.mxu2 %v19_v14  ;;  %119 = vmatpush.msra.mxu3 %v19_v14 }
  0x1f   :  { %52 = vmatpush.msra.mxu0 %v19_v14  ;;  %117 = vmatpush.msra.mxu1 %v19_v14 }
  0x20   :  { %121 = vmatpush.msra.mxu2 %v18_v15  ;;  %122 = vmatpush.msra.mxu3 %v18_v15 }
  0x21   :  { %60 = vmatmul.f32.vlgmr.msra.gmra.mxu2 %v16_v16  ;;  %63 = vmatmul.f32.vlgmr.msra.gmra.mxu3 %v17_v17 }
  0x22   :  { %53 = vmatpush.msra.mxu0 %v18_v15  ;;  %120 = vmatpush.msra.mxu1 %v18_v15 }
  0x23   :  { %54 = vmatmul.f32.vlgmr.msra.gmra.mxu0 %v14_v18  ;;  %57 = vmatmul.f32.vlgmr.msra.gmra.mxu1 %v15_v19 }
  0xa0   :  { %v55_v21 = vpop.f32.mrf.mxu0  ;;  %v58_v22 = vpop.f32.mrf.mxu1 }
  0xa1   :  { %v56_v23 = vadd.f32 %v123_v20, %v55_v21  ;;  %v59_v24 = vadd.f32 %v123_v20, %v58_v22 }
  0xa3   :  { %67 = vst [vmem:[%s222_s3] sm:$0xff] %v56_v23 }
  0xa4   :  { %68 = vst [vmem:[%s222_s3 + $0x8] sm:$0xff] %v59_v24  ;;  %v61_v25 = vpop.f32.mrf.mxu2  ;;  %v64_v26 = vpop.f32.mrf.mxu3 }
  0xa5   :  { %v62_v27 = vadd.f32 %v123_v20, %v61_v25  ;;  %v65_v28 = vadd.f32 %v123_v20, %v64_v26 }
  0xa7   :  { %69 = vst [vmem:[%s222_s3 + $0x10] sm:$0xff] %v62_v27 }
  0xa8   :  { %70 = vst [vmem:[%s222_s3 + $0x18] sm:$0xff] %v65_v28 }

// kernel: lemode_forward.4
= control target key start
LH: loop header
LB: loop body
LE: loop exit
PB: predicated region body
PF: predicated region fallthrough
CT: control target
= control target key end

     0   :  { %s1019_s23 = smov [#allocation6]   ;;  %s1020_s24 = smov [#allocation7]   ;;  %s1649_s0 = inlined_call_operand.vmem [shape: s32[9], index: 0, kind: input, shape index: {}]   ;;  %s1650_s2 = inlined_call_operand.vmem [shape: f32[9], index: 2, kind: input, shape index: {}]   ;;  %s1651_s3 = inlined_call_operand.vmem [shape: f32[4,8,128], index: 3, kind: input, shape index: {}]   ;;  %s1652_s4 = inlined_call_operand.vmem [shape: f32[9,8,256], index: 4, kind: input, shape index: {}]   ;;  %s1653_s5 = inlined_call_operand.vmem [shape: f32[256,512], index: 5, kind: input, shape index: {}]   ;;  %s1654_s6 = inlined_call_operand.vmem [shape: f32[8,512], index: 6, kind: input, shape index: {}]   ;;  %s1655_s7 = inlined_call_operand.vmem [shape: f32[128,128], index: 7, kind: input, shape index: {}]   ;;  %s1656_s8 = inlined_call_operand.vmem [shape: f32[8,128], index: 8, kind: input, shape index: {}]   ;;  %s1657_s9 = inlined_call_operand.vmem [shape: f32[128,128], index: 9, kind: input, shape index: {}]   ;;  %s1658_s10 = inlined_call_operand.vmem [shape: f32[8,128], index: 10, kind: input, shape index: {}]   ;;  %s1659_s11 = inlined_call_operand.vmem [shape: f32[4,8,128], index: 11, kind: output, shape index: {}]   ;;  %s1660_s1 = inlined_call_operand.vmem [shape: s32[9], index: 1, kind: input, shape index: {}]  }
   0x1   :  { %s17_s19 = sshll.u32 %s1649_s0, 4  ;;  %s22_s22 = sshll.u32 %s1660_s1, 4  ;;  %s18_s19 = int_to_ptr.vmem [resolvable:$true] %s17_s19  ;;  %s23_s22 = int_to_ptr.vmem [resolvable:$true] %s22_s22 }
   0x2   :  { %20 = dma.vmem_to_smem %s18_s19, 16, %s1019_s23, [#allocation5] }
   0x3   :  { %25 = dma.vmem_to_smem %s23_s22, 16, %s1020_s24, [#allocation5] }
   0x4   :  { %1009 = dma.done.wait [#allocation5], 32 }
   0x5   :  { %1010 = vsyncadd [#allocation5], 4294967264 }
   0x6   :  { %28 = sfence }
   0x7   :  { %29 = vsyncpa [#allocation9], 0  ;;  %s1089_s25 = smov 0  }
   0x8 LB: > { %s1095_s0 = sadd.s32 4294967295, %s1017_s25   ;;  %p916_p0 = scmp.ge.s32.totalorder %s1017_s25, 1  ;;  %s1017_s25 = sphi %s1089_s25, %s35_s25  }
   0x9   : > { %p269_p1 = scmp.lt.s32.totalorder %s1017_s25, 10  ;;  %p917_p2 = scmp.ne.s32.totalorder %s1095_s0, 0 }
   0xa   : > { %s281_s27 = sshll.u32 %s1650_s2, 4  ;;  %p940_p4 = scmp.eq.s32.totalorder %s1095_s0, 0  ;;  %s282_s27 = int_to_ptr.vmem [resolvable:$true] %s281_s27 }
   0xb   : > { %p270_p3 = pnand %p916_p0, %p269_p1  ;;  %s1021_s28 = smov [#allocation8]  }
   0xd   : > { %p936_p5 = pneg %p270_p3  ;;  %329 = sbr.rel (%p270_p3) target bundleno = 526 (0x20e), region = 56 }
   0xf   : > { %p937_p6 = pnand %p940_p4, %p936_p5 }
  0x11   : > { %939 = dma.vmem_to_smem (!%p937_p6), %s282_s27, 16, %s1021_s28, [#allocation9]  }
  0x12   : > { %1012 = dma.done.wait (%p940_p4), [#allocation9], 16  }
  0x13   : > { %1014 = vsyncadd (%p940_p4), [#allocation9], 4294967280 }
  0x14   : > { %336 = sfence }
  0x15   : > { %s372_s29 = sld [smem:[#allocation6 + %s1095_s0]]  ;;  %p378_p7 = scmp.lt.s32.totalorder %s1095_s0, 8 }
  0x16   : > { %s383_s30 = sld [smem:[#allocation6 + %s1095_s0]] }
  0x17   : > { %s379_s12 = scalar_select %p378_p7, %s1095_s0, 8 }
  0x18   : > { %s1109_s13 = sld [smem:[#allocation8 + %s1095_s0]] }
  0x19   : > { %s931_s14 = sshll.u32 %s379_s12, 4  ;;  %s390_s15 = sld [smem:[#allocation7 + %s1095_s0]] }
  0x1a   : > { %s1115_s18 = scalar_lea.vmem %s1652_s4, %s931_s14 }
  0x1b   : > { %p373_p8 = scmp.lt.s32.totalorder %s372_s29, 3 }
  0x1c   : > { %p384_p9 = scmp.lt.s32.totalorder %s383_s30, 3  ;;  %394 = sbr.rel (%p917_p2) target bundleno = 36 (0x24), region = 64 }
  0x1d   : > { %s1662_s29 = smov (!%p373_p8, %s372_s29), 3 }
  0x1e   : > { %s1664_s30 = smov (!%p384_p9, %s383_s30), 3  ;;  %s921_s19 = sshll.u32 %s1662_s29, 3 }
  0x1f   : > { %s376_s22 = scalar_lea.vmem %s1651_s3, %s921_s19  ;;  %s924_s23 = sshll.u32 %s1664_s30, 3 }
  0x20   : > { %s1123_s26 = scalar_lea.vmem %s1659_s11, %s924_s23 }
  0x21   : > { %v1022_v0 = vmov 0.0  }
  0x22   : > { %395 = vst [vmem:[#allocation2] sm:$0xff] %v1022_v0 }
  0x23   : > { %396 = vst [vmem:[#allocation3] sm:$0xff] %v1022_v0 }
  0x24 PF: > { %p926_p10 = scmp.ne.s32.totalorder %s390_s15, 1 }
  0x26   : > { %400 = sbr.rel (%p926_p10) target bundleno = 45 (0x2d), region = 68 }
  0x2b   : > { %v401_v1 = vld [vmem:[%s376_s22] sm:$0xff] }
  0x2c   : > { %402 = vst [vmem:[#allocation4] sm:$0xff] %v401_v1 }
  0x2d PF: > { %v469_v2 = vld [vmem:[%s1653_s5 + $0x1e8] sm:$0xff]  ;;  %v1169_v16 = vld [vmem:[#allocation2] sm:$0xff]  ;;  %v471_v36 = vld [vmem:[%s1653_s5 + $0x1f8] sm:$0xff] }
  0x2e   : > { %v465_v3 = vld [vmem:[%s1653_s5 + $0x1c8] sm:$0xff]  ;;  %580 = vmatpush.msra.mxu2 %v469_v2  ;;  %v535_v37 = vld [vmem:[%s1653_s5 + $0x3f8] sm:$0xff]  ;;  %v468_v40 = vld [vmem:[%s1653_s5 + $0x1e0] sm:$0xff] }
  0x2f   : > { %v533_v4 = vld [vmem:[%s1653_s5 + $0x3e8] sm:$0xff]  ;;  %v467_v38 = vld [vmem:[%s1653_s5 + $0x1d8] sm:$0xff]  ;;  %v464_v41 = vld [vmem:[%s1653_s5 + $0x1c0] sm:$0xff]  ;;  %540 = vmatpush.msra.mxu0 %v468_v40 }
  0x30   : > { %600 = vmatpush.msra.mxu3 %v533_v4  ;;  %v529_v5 = vld [vmem:[%s1653_s5 + $0x3c8] sm:$0xff]  ;;  %581 = vmatpush.msra.mxu2 %v465_v3  ;;  %v531_v39 = vld [vmem:[%s1653_s5 + $0x3d8] sm:$0xff]  ;;  %v460_v44 = vld [vmem:[%s1653_s5 + $0x1a0] sm:$0xff] }
  0x31   : > { %v461_v6 = vld [vmem:[%s1653_s5 + $0x1a8] sm:$0xff]  ;;  %v463_v42 = vld [vmem:[%s1653_s5 + $0x1b8] sm:$0xff]  ;;  %541 = vmatpush.msra.mxu0 %v464_v41  ;;  %v532_v47 = vld [vmem:[%s1653_s5 + $0x3e0] sm:$0xff] }
  0x32   : > { %v525_v7 = vld [vmem:[%s1653_s5 + $0x3a8] sm:$0xff]  ;;  %601 = vmatpush.msra.mxu3 %v529_v5  ;;  %582 = vmatpush.msra.mxu2 %v461_v6  ;;  %v527_v43 = vld [vmem:[%s1653_s5 + $0x3b8] sm:$0xff]  ;;  %v456_v48 = vld [vmem:[%s1653_s5 + $0x180] sm:$0xff] }
  0x33   : > { %v457_v8 = vld [vmem:[%s1653_s5 + $0x188] sm:$0xff]  ;;  %v1225_v35 = vld [vmem:[#allocation4] sm:$0xff]  ;;  %v459_v45 = vld [vmem:[%s1653_s5 + $0x198] sm:$0xff]  ;;  %542 = vmatpush.msra.mxu0 %v460_v44  ;;  %560 = vmatpush.msra.mxu1 %v532_v47 }
  0x34   : > { %v521_v9 = vld [vmem:[%s1653_s5 + $0x388] sm:$0xff]  ;;  %602 = vmatpush.msra.mxu3 %v525_v7  ;;  %583 = vmatpush.msra.mxu2 %v457_v8  ;;  %v523_v46 = vld [vmem:[%s1653_s5 + $0x398] sm:$0xff]  ;;  %v528_v49 = vld [vmem:[%s1653_s5 + $0x3c0] sm:$0xff] }
  0x35   : > { %v453_v10 = vld [vmem:[%s1653_s5 + $0x168] sm:$0xff]  ;;  %v455_v50 = vld [vmem:[%s1653_s5 + $0x178] sm:$0xff]  ;;  %v452_v52 = vld [vmem:[%s1653_s5 + $0x160] sm:$0xff]  ;;  %543 = vmatpush.msra.mxu0 %v456_v48  ;;  %561 = vmatpush.msra.mxu1 %v528_v49 }
  0x36   : > { %v517_v11 = vld [vmem:[%s1653_s5 + $0x368] sm:$0xff]  ;;  %603 = vmatpush.msra.mxu3 %v521_v9  ;;  %584 = vmatpush.msra.mxu2 %v453_v10  ;;  %v519_v51 = vld [vmem:[%s1653_s5 + $0x378] sm:$0xff]  ;;  %v524_v53 = vld [vmem:[%s1653_s5 + $0x3a0] sm:$0xff] }
  0x37   : > { %v449_v12 = vld [vmem:[%s1653_s5 + $0x148] sm:$0xff]  ;;  %v451_v54 = vld [vmem:[%s1653_s5 + $0x158] sm:$0xff]  ;;  %v448_v56 = vld [vmem:[%s1653_s5 + $0x140] sm:$0xff]  ;;  %544 = vmatpush.msra.mxu0 %v452_v52  ;;  %562 = vmatpush.msra.mxu1 %v524_v53 }
  0x38   : > { %v513_v13 = vld [vmem:[%s1653_s5 + $0x348] sm:$0xff]  ;;  %604 = vmatpush.msra.mxu3 %v517_v11  ;;  %585 = vmatpush.msra.mxu2 %v449_v12  ;;  %v515_v55 = vld [vmem:[%s1653_s5 + $0x358] sm:$0xff]  ;;  %v520_v57 = vld [vmem:[%s1653_s5 + $0x380] sm:$0xff] }
  0x39   : > { %v445_v14 = vld [vmem:[%s1653_s5 + $0x128] sm:$0xff]  ;;  %v447_v58 = vld [vmem:[%s1653_s5 + $0x138] sm:$0xff]  ;;  %v444_v60 = vld [vmem:[%s1653_s5 + $0x120] sm:$0xff]  ;;  %545 = vmatpush.msra.mxu0 %v448_v56  ;;  %563 = vmatpush.msra.mxu1 %v520_v57 }
  0x3a   : > { %v509_v15 = vld [vmem:[%s1653_s5 + $0x328] sm:$0xff]  ;;  %605 = vmatpush.msra.mxu3 %v513_v13  ;;  %586 = vmatpush.msra.mxu2 %v445_v14  ;;  %v511_v59 = vld [vmem:[%s1653_s5 + $0x338] sm:$0xff]  ;;  %v516_v61 = vld [vmem:[%s1653_s5 + $0x360] sm:$0xff] }
  0x3b   : > { %v441_v17 = vld [vmem:[%s1653_s5 + $0x108] sm:$0xff]  ;;  %v443_v62 = vld [vmem:[%s1653_s5 + $0x118] sm:$0xff]  ;;  %v440_v0 = vld [vmem:[%s1653_s5 + $0x100] sm:$0xff]  ;;  %546 = vmatpush.msra.mxu0 %v444_v60  ;;  %564 = vmatpush.msra.mxu1 %v516_v61 }
  0x3c   : > { %v505_v18 = vld [vmem:[%s1653_s5 + $0x308] sm:$0xff]  ;;  %606 = vmatpush.msra.mxu3 %v509_v15  ;;  %587 = vmatpush.msra.mxu2 %v441_v17  ;;  %v507_v63 = vld [vmem:[%s1653_s5 + $0x318] sm:$0xff]  ;;  %v512_v1 = vld [vmem:[%s1653_s5 + $0x340] sm:$0xff] }
  0x3d   : > { %v437_v19 = vld [vmem:[%s1653_s5 + $0xe8] sm:$0xff]  ;;  %v439_v2 = vld [vmem:[%s1653_s5 + $0xf8] sm:$0xff]  ;;  %v436_v4 = vld [vmem:[%s1653_s5 + $0xe0] sm:$0xff]  ;;  %547 = vmatpush.msra.mxu0 %v440_v0  ;;  %565 = vmatpush.msra.mxu1 %v512_v1 }
  0x3e   : > { %v501_v20 = vld [vmem:[%s1653_s5 + $0x2e8] sm:$0xff]  ;;  %607 = vmatpush.msra.mxu3 %v505_v18  ;;  %588 = vmatpush.msra.mxu2 %v437_v19  ;;  %v503_v3 = vld [vmem:[%s1653_s5 + $0x2f8] sm:$0xff]  ;;  %v508_v5 = vld [vmem:[%s1653_s5 + $0x320] sm:$0xff] }
  0x3f   : > { %v433_v21 = vld [vmem:[%s1653_s5 + $0xc8] sm:$0xff]  ;;  %v435_v6 = vld [vmem:[%s1653_s5 + $0xd8] sm:$0xff]  ;;  %v432_v8 = vld [vmem:[%s1653_s5 + $0xc0] sm:$0xff]  ;;  %548 = vmatpush.msra.mxu0 %v436_v4  ;;  %566 = vmatpush.msra.mxu1 %v508_v5 }
  0x40   : > { %v497_v22 = vld [vmem:[%s1653_s5 + $0x2c8] sm:$0xff]  ;;  %608 = vmatpush.msra.mxu3 %v501_v20  ;;  %589 = vmatpush.msra.mxu2 %v433_v21  ;;  %v499_v7 = vld [vmem:[%s1653_s5 + $0x2d8] sm:$0xff]  ;;  %v504_v9 = vld [vmem:[%s1653_s5 + $0x300] sm:$0xff] }
  0x41   : > { %v429_v23 = vld [vmem:[%s1653_s5 + $0xa8] sm:$0xff]  ;;  %v431_v10 = vld [vmem:[%s1653_s5 + $0xb8] sm:$0xff]  ;;  %v428_v12 = vld [vmem:[%s1653_s5 + $0xa0] sm:$0xff]  ;;  %549 = vmatpush.msra.mxu0 %v432_v8  ;;  %567 = vmatpush.msra.mxu1 %v504_v9 }
  0x42   : > { %v493_v24 = vld [vmem:[%s1653_s5 + $0x2a8] sm:$0xff]  ;;  %609 = vmatpush.msra.mxu3 %v497_v22  ;;  %590 = vmatpush.msra.mxu2 %v429_v23  ;;  %v495_v11 = vld [vmem:[%s1653_s5 + $0x2b8] sm:$0xff]  ;;  %v500_v13 = vld [vmem:[%s1653_s5 + $0x2e0] sm:$0xff] }
  0x43   : > { %v425_v25 = vld [vmem:[%s1653_s5 + $0x88] sm:$0xff]  ;;  %v427_v14 = vld [vmem:[%s1653_s5 + $0x98] sm:$0xff]  ;;  %v424_v17 = vld [vmem:[%s1653_s5 + $0x80] sm:$0xff]  ;;  %550 = vmatpush.msra.mxu0 %v428_v12  ;;  %568 = vmatpush.msra.mxu1 %v500_v13 }
  0x44   : > { %v489_v26 = vld [vmem:[%s1653_s5 + $0x288] sm:$0xff]  ;;  %610 = vmatpush.msra.mxu3 %v493_v24  ;;  %591 = vmatpush.msra.mxu2 %v425_v25  ;;  %v491_v15 = vld [vmem:[%s1653_s5 + $0x298] sm:$0xff]  ;;  %v496_v18 = vld [vmem:[%s1653_s5 + $0x2c0] sm:$0xff] }
  0x45   : > { %v421_v27 = vld [vmem:[%s1653_s5 + $0x68] sm:$0xff]  ;;  %v423_v19 = vld [vmem:[%s1653_s5 + $0x78] sm:$0xff]  ;;  %v420_v21 = vld [vmem:[%s1653_s5 + $0x60] sm:$0xff]  ;;  %551 = vmatpush.msra.mxu0 %v424_v17  ;;  %569 = vmatpush.msra.mxu1 %v496_v18 }
  0x46   : > { %v485_v28 = vld [vmem:[%s1653_s5 + $0x268] sm:$0xff]  ;;  %611 = vmatpush.msra.mxu3 %v489_v26  ;;  %592 = vmatpush.msra.mxu2 %v421_v27  ;;  %v487_v20 = vld [vmem:[%s1653_s5 + $0x278] sm:$0xff]  ;;  %v492_v22 = vld [vmem:[%s1653_s5 + $0x2a0] sm:$0xff] }
  0x47   : > { %v417_v29 = vld [vmem:[%s1653_s5 + $0x48] sm:$0xff]  ;;  %v419_v23 = vld [vmem:[%s1653_s5 + $0x58] sm:$0xff]  ;;  %v416_v25 = vld [vmem:[%s1653_s5 + $0x40] sm:$0xff]  ;;  %552 = vmatpush.msra.mxu0 %v420_v21  ;;  %570 = vmatpush.msra.mxu1 %v492_v22 }
  0x48   : > { %v481_v30 = vld [vmem:[%s1653_s5 + $0x248] sm:$0xff]  ;;  %612 = vmatpush.msra.mxu3 %v485_v28  ;;  %593 = vmatpush.msra.mxu2 %v417_v29  ;;  %v483_v24 = vld [vmem:[%s1653_s5 + $0x258] sm:$0xff]  ;;  %v488_v26 = vld [vmem:[%s1653_s5 + $0x280] sm:$0xff] }
  0x49   : > { %v413_v31 = vld [vmem:[%s1653_s5 + $0x28] sm:$0xff]  ;;  %v415_v27 = vld [vmem:[%s1653_s5 + $0x38] sm:$0xff]  ;;  %v412_v29 = vld [vmem:[%s1653_s5 + $0x20] sm:$0xff]  ;;  %553 = vmatpush.msra.mxu0 %v416_v25  ;;  %571 = vmatpush.msra.mxu1 %v488_v26 }
  0x4a   : > { %v477_v32 = vld [vmem:[%s1653_s5 + $0x228] sm:$0xff]  ;;  %613 = vmatpush.msra.mxu3 %v481_v30  ;;  %594 = vmatpush.msra.mxu2 %v413_v31  ;;  %v479_v28 = vld [vmem:[%s1653_s5 + $0x238] sm:$0xff]  ;;  %v484_v30 = vld [vmem:[%s1653_s5 + $0x260] sm:$0xff] }
  0x4b   : > { %v409_v33 = vld [vmem:[%s1653_s5 + $0x8] sm:$0xff]  ;;  %v411_v31 = vld [vmem:[%s1653_s5 + $0x18] sm:$0xff]  ;;  %554 = vmatpush.msra.mxu0 %v412_v29  ;;  %572 = vmatpush.msra.mxu1 %v484_v30  ;;  %v454_v40 = vld [vmem:[%s1653_s5 + $0x170] sm:$0xff] }
  0x4c   : > { %v473_v34 = vld [vmem:[%s1653_s5 + $0x208] sm:$0xff]  ;;  %614 = vmatpush.msra.mxu3 %v477_v32  ;;  %595 = vmatpush.msra.mxu2 %v409_v33  ;;  %v475_v32 = vld [vmem:[%s1653_s5 + $0x218] sm:$0xff]  ;;  %v408_v33 = vld [vmem:[%s1653_s5] sm:$0xff] }
  0x4d   : > { %596 = vmatmul.f32.vlgmr.msra.gmra.mxu2 %v1225_v35  ;;  %555 = vmatpush.msra.mxu0 %v408_v33  ;;  %v450_v41 = vld [vmem:[%s1653_s5 + $0x150] sm:$0xff]  ;;  %v472_v47 = vld [vmem:[%s1653_s5 + $0x200] sm:$0xff]  ;;  %v757_v1 = vld [vmem:[%s1655_s7 + $0x58] sm:$0xff] }
  0x4e   : > { %615 = vmatpush.msra.mxu3 %v473_v34  ;;  %660 = vmatpush.msrb.mxu2 %v471_v36  ;;  %v480_v34 = vld [vmem:[%s1653_s5 + $0x240] sm:$0xff]  ;;  %v470_v36 = vld [vmem:[%s1653_s5 + $0x1f0] sm:$0xff]  ;;  %v755_v5 = vld [vmem:[%s1655_s7 + $0x48] sm:$0xff] }
  0x4f   : > { %616 = vmatmul.f32.vlgmr.msra.gmra.mxu3 %v1169_v16  ;;  %573 = vmatpush.msra.mxu1 %v480_v34  ;;  %v438_v44 = vld [vmem:[%s1653_s5 + $0xf0] sm:$0xff]  ;;  %v537_v8 = vld [vmem:[%s1654_s6 + $0x8] sm:$0xff]  ;;  %v753_v12 = vld [vmem:[%s1655_s7 + $0x38] sm:$0xff] }
  0x50   : > { %680 = vmatpush.msrb.mxu3 %v535_v37  ;;  %661 = vmatpush.msrb.mxu2 %v467_v38  ;;  %v466_v37 = vld [vmem:[%s1653_s5 + $0x1d0] sm:$0xff]  ;;  %v750_v22 = vld [vmem:[%s1655_s7 + $0x20] sm:$0xff]  ;;  %v747_v26 = vld [vmem:[%s1655_s7 + $0x8] sm:$0xff] }
  0x51   : > { %620 = vmatpush.msrb.mxu0 %v470_v36  ;;  %v462_v38 = vld [vmem:[%s1653_s5 + $0x1b0] sm:$0xff] }
  0x52   : > { %681 = vmatpush.msrb.mxu3 %v531_v39  ;;  %662 = vmatpush.msrb.mxu2 %v463_v42  ;;  %v458_v39 = vld [vmem:[%s1653_s5 + $0x190] sm:$0xff] }
  0x53   : > { %556 = vmatmul.f32.vlgmr.msra.gmra.mxu0 %v1225_v35  ;;  %v446_v42 = vld [vmem:[%s1653_s5 + $0x130] sm:$0xff] }
  0x54   : > { %682 = vmatpush.msrb.mxu3 %v527_v43  ;;  %663 = vmatpush.msrb.mxu2 %v459_v45  ;;  %v442_v43 = vld [vmem:[%s1653_s5 + $0x110] sm:$0xff]  ;;  %v476_v45 = vld [vmem:[%s1653_s5 + $0x220] sm:$0xff] }
  0x55   : > { %621 = vmatpush.msrb.mxu0 %v466_v37  ;;  %574 = vmatpush.msra.mxu1 %v476_v45  ;;  %v430_v48 = vld [vmem:[%s1653_s5 + $0xb0] sm:$0xff] }
  0x56   : > { %683 = vmatpush.msrb.mxu3 %v523_v46  ;;  %664 = vmatpush.msrb.mxu2 %v455_v50  ;;  %v434_v46 = vld [vmem:[%s1653_s5 + $0xd0] sm:$0xff] }
  0x57   : > { %622 = vmatpush.msrb.mxu0 %v462_v38  ;;  %575 = vmatpush.msra.mxu1 %v472_v47  ;;  %v426_v49 = vld [vmem:[%s1653_s5 + $0x90] sm:$0xff]  ;;  %v539_v38 = vld [vmem:[%s1654_s6 + $0x18] sm:$0xff] }
  0x58   : > { %684 = vmatpush.msrb.mxu3 %v519_v51  ;;  %665 = vmatpush.msrb.mxu2 %v451_v54  ;;  %v422_v50 = vld [vmem:[%s1653_s5 + $0x70] sm:$0xff] }
  0x59   : > { %623 = vmatpush.msrb.mxu0 %v458_v39  ;;  %576 = vmatmul.f32.vlgmr.msra.gmra.mxu1 %v1169_v16  ;;  %v534_v51 = vld [vmem:[%s1653_s5 + $0x3f0] sm:$0xff] }
  0x5a   : > { %685 = vmatpush.msrb.mxu3 %v515_v55  ;;  %666 = vmatpush.msrb.mxu2 %v447_v58  ;;  %v418_v52 = vld [vmem:[%s1653_s5 + $0x50] sm:$0xff]  ;;  %v761_v58 = vld [vmem:[%s1655_s7 + $0x78] sm:$0xff] }
  0x5b   : > { %624 = vmatpush.msrb.mxu0 %v454_v40  ;;  %640 = vmatpush.msrb.mxu1 %v534_v51  ;;  %v530_v53 = vld [vmem:[%s1653_s5 + $0x3d0] sm:$0xff] }
  0x5c   : > { %686 = vmatpush.msrb.mxu3 %v511_v59  ;;  %667 = vmatpush.msrb.mxu2 %v443_v62  ;;  %v414_v54 = vld [vmem:[%s1653_s5 + $0x30] sm:$0xff]  ;;  %v759_v62 = vld [vmem:[%s1655_s7 + $0x68] sm:$0xff] }
  0x5d   : > { %625 = vmatpush.msrb.mxu0 %v450_v41  ;;  %641 = vmatpush.msrb.mxu1 %v530_v53  ;;  %v526_v55 = vld [vmem:[%s1653_s5 + $0x3b0] sm:$0xff]  ;;  %v828_v53 = vld [vmem:[%s1115_s18 + $0x8] sm:$0xff] }
  0x5e   : > { %687 = vmatpush.msrb.mxu3 %v507_v63  ;;  %668 = vmatpush.msrb.mxu2 %v439_v2  ;;  %v410_v56 = vld [vmem:[%s1653_s5 + $0x10] sm:$0xff] }
  0x5f   : > { %626 = vmatpush.msrb.mxu0 %v446_v42  ;;  %642 = vmatpush.msrb.mxu1 %v526_v55  ;;  %v522_v57 = vld [vmem:[%s1653_s5 + $0x390] sm:$0xff] }
  0x60   : > { %688 = vmatpush.msrb.mxu3 %v503_v3  ;;  %669 = vmatpush.msrb.mxu2 %v435_v6  ;;  %v518_v59 = vld [vmem:[%s1653_s5 + $0x370] sm:$0xff] }
  0x61   : > { %627 = vmatpush.msrb.mxu0 %v442_v43  ;;  %643 = vmatpush.msrb.mxu1 %v522_v57  ;;  %v760_v60 = vld [vmem:[%s1655_s7 + $0x70] sm:$0xff] }
  0x62   : > { %689 = vmatpush.msrb.mxu3 %v499_v7  ;;  %670 = vmatpush.msrb.mxu2 %v431_v10  ;;  %v514_v61 = vld [vmem:[%s1653_s5 + $0x350] sm:$0xff]  ;;  %v754_v7 = vld [vmem:[%s1655_s7 + $0x40] sm:$0xff] }
  0x63   : > { %628 = vmatpush.msrb.mxu0 %v438_v44  ;;  %644 = vmatpush.msrb.mxu1 %v518_v59  ;;  %v510_v63 = vld [vmem:[%s1653_s5 + $0x330] sm:$0xff]  ;;  %v719_v44 = vstv %s1109_s13  ;;  %v801_v59 = vld [vmem:[%s1657_s9 + $0x60] sm:$0xff] }
  0x64   : > { %690 = vmatpush.msrb.mxu3 %v495_v11  ;;  %671 = vmatpush.msrb.mxu2 %v427_v14  ;;  %v506_v0 = vld [vmem:[%s1653_s5 + $0x310] sm:$0xff] }
  0x65   : > { %629 = vmatpush.msrb.mxu0 %v434_v46  ;;  %645 = vmatpush.msrb.mxu1 %v514_v61  ;;  %v502_v2 = vld [vmem:[%s1653_s5 + $0x2f0] sm:$0xff] }
  0x66   : > { %691 = vmatpush.msrb.mxu3 %v491_v15  ;;  %672 = vmatpush.msrb.mxu2 %v423_v19  ;;  %v756_v3 = vld [vmem:[%s1655_s7 + $0x50] sm:$0xff]  ;;  %v751_v19 = vld [vmem:[%s1655_s7 + $0x28] sm:$0xff] }
  0x67   : > { %630 = vmatpush.msrb.mxu0 %v430_v48  ;;  %646 = vmatpush.msrb.mxu1 %v510_v63  ;;  %v498_v4 = vld [vmem:[%s1653_s5 + $0x2d0] sm:$0xff]  ;;  %v797_v63 = vld [vmem:[%s1657_s9 + $0x40] sm:$0xff] }
  0x68   : > { %692 = vmatpush.msrb.mxu3 %v487_v20  ;;  %673 = vmatpush.msrb.mxu2 %v419_v23  ;;  %v494_v6 = vld [vmem:[%s1653_s5 + $0x2b0] sm:$0xff] }
  0x69   : > { %631 = vmatpush.msrb.mxu0 %v426_v49  ;;  %647 = vmatpush.msrb.mxu1 %v506_v0  ;;  %v490_v11 = vld [vmem:[%s1653_s5 + $0x290] sm:$0xff]  ;;  %v404_v49 = vld [vmem:[#allocation3] sm:$0xff] }
  0x6a   : > { %693 = vmatpush.msrb.mxu3 %v483_v24  ;;  %674 = vmatpush.msrb.mxu2 %v415_v27  ;;  %v486_v14 = vld [vmem:[%s1653_s5 + $0x270] sm:$0xff]  ;;  %v749_v24 = vld [vmem:[%s1655_s7 + $0x18] sm:$0xff]  ;;  %v746_v27 = vld [vmem:[%s1655_s7] sm:$0xff] }
  0x6b   : > { %632 = vmatpush.msrb.mxu0 %v422_v50  ;;  %648 = vmatpush.msrb.mxu1 %v502_v2  ;;  %v752_v15 = vld [vmem:[%s1655_s7 + $0x30] sm:$0xff] }
  0x6c   : > { %694 = vmatpush.msrb.mxu3 %v479_v28  ;;  %675 = vmatpush.msrb.mxu2 %v411_v31  ;;  %v482_v18 = vld [vmem:[%s1653_s5 + $0x250] sm:$0xff] }
  0x6d   : > { %676 = vmatmul.f32.vlgmr.msrb.gmra.mxu2 %v1225_v35  ;;  %633 = vmatpush.msrb.mxu0 %v418_v52  ;;  %v478_v21 = vld [vmem:[%s1653_s5 + $0x230] sm:$0xff] }
  0x6e   : > { %695 = vmatpush.msrb.mxu3 %v475_v32  ;;  %649 = vmatpush.msrb.mxu1 %v498_v4  ;;  %v474_v23 = vld [vmem:[%s1653_s5 + $0x210] sm:$0xff] }
  0x6f   : > { %696 = vmatmul.f32.vlgmr.msrb.gmra.mxu3 %v1169_v16  ;;  %634 = vmatpush.msrb.mxu0 %v414_v54  ;;  %v748_v25 = vld [vmem:[%s1655_s7 + $0x10] sm:$0xff] }
  0x70   : > { %650 = vmatpush.msrb.mxu1 %v494_v6  ;;  %v803_v57 = vld [vmem:[%s1657_s9 + $0x70] sm:$0xff]  ;;  %v796_v6 = vld [vmem:[%s1657_s9 + $0x38] sm:$0xff] }
  0x71   : > { %635 = vmatpush.msrb.mxu0 %v410_v56  ;;  %v804_v56 = vld [vmem:[%s1657_s9 + $0x78] sm:$0xff]  ;;  %v799_v61 = vld [vmem:[%s1657_s9 + $0x50] sm:$0xff] }
  0x72   : > { %636 = vmatmul.f32.vlgmr.msrb.gmra.mxu0 %v1225_v35  ;;  %v758_v35 = vld [vmem:[%s1655_s7 + $0x60] sm:$0xff]  ;;  %651 = vmatpush.msrb.mxu1 %v490_v11  ;;  %v792_v11 = vld [vmem:[%s1657_s9 + $0x18] sm:$0xff] }
  0x73   : > { %763 = vmatpush.msra.mxu0 %v761_v58  ;;  %v802_v58 = vld [vmem:[%s1657_s9 + $0x68] sm:$0xff] }
  0x74   : > { %652 = vmatpush.msrb.mxu1 %v486_v14 }
  0x75   : > { %764 = vmatpush.msra.mxu0 %v760_v60  ;;  %v800_v60 = vld [vmem:[%s1657_s9 + $0x58] sm:$0xff] }
  0x76   : > { %653 = vmatpush.msrb.mxu1 %v482_v18 }
  0x77   : > { %765 = vmatpush.msra.mxu0 %v759_v62  ;;  %v798_v62 = vld [vmem:[%s1657_s9 + $0x48] sm:$0xff] }
  0x78   : > { %654 = vmatpush.msrb.mxu1 %v478_v21 }
  0x79   : > { %766 = vmatpush.msra.mxu0 %v758_v35  ;;  %v536_v35 = vld [vmem:[%s1654_s6] sm:$0xff] }
  0x7a   : > { %655 = vmatpush.msrb.mxu1 %v474_v23 }
  0x7b   : > { %767 = vmatpush.msra.mxu0 %v757_v1  ;;  %656 = vmatmul.f32.vlgmr.msrb.gmra.mxu1 %v1169_v16 }
  0x7c   : > { %806 = vmatpush.msra.mxu1 %v804_v56 }
  0x7d   : > { %768 = vmatpush.msra.mxu0 %v756_v3 }
  0x7e   : > { %807 = vmatpush.msra.mxu1 %v803_v57 }
  0x7f   : > { %769 = vmatpush.msra.mxu0 %v755_v5 }
  0x80   : > { %808 = vmatpush.msra.mxu1 %v802_v58 }
  0x81   : > { %770 = vmatpush.msra.mxu0 %v754_v7 }
  0x82   : > { %809 = vmatpush.msra.mxu1 %v801_v59 }
  0x83   : > { %771 = vmatpush.msra.mxu0 %v753_v12  ;;  %v791_v12 = vld [vmem:[%s1657_s9 + $0x10] sm:$0xff] }
  0x84   : > { %810 = vmatpush.msra.mxu1 %v800_v60 }
  0x85   : > { %772 = vmatpush.msra.mxu0 %v752_v15  ;;  %v789_v15 = vld [vmem:[%s1657_s9] sm:$0xff] }
  0x86   : > { %811 = vmatpush.msra.mxu1 %v799_v61 }
  0x87   : > { %773 = vmatpush.msra.mxu0 %v751_v19 }
  0x88   : > { %812 = vmatpush.msra.mxu1 %v798_v62 }
  0x89   : > { %774 = vmatpush.msra.mxu0 %v750_v22  ;;  %v538_v22 = vld [vmem:[%s1654_s6 + $0x10] sm:$0xff] }
  0x8a   : > { %813 = vmatpush.msra.mxu1 %v797_v63 }
  0x8b   : > { %775 = vmatpush.msra.mxu0 %v749_v24 }
  0x8c   : > { %814 = vmatpush.msra.mxu1 %v796_v6 }
  0x8d   : > { %776 = vmatpush.msra.mxu0 %v748_v25 }
  0x8f   : > { %777 = vmatpush.msra.mxu0 %v747_v26 }
  0x91   : > { %778 = vmatpush.msra.mxu0 %v746_v27 }
  0xd0   : > { %v597_v9 = vpop.f32.mrf.mxu2  ;;  %v557_v0 = vpop.f32.mrf.mxu0 }
  0xd1   : > { %v598_v13 = vadd.f32 %v597_v9, %v537_v8  ;;  %v558_v1 = vadd.f32 %v557_v0, %v536_v35  ;;  %v795_v8 = vld [vmem:[%s1657_s9 + $0x30] sm:$0xff]  ;;  %v794_v9 = vld [vmem:[%s1657_s9 + $0x28] sm:$0xff] }
  0xd2   : > { %v617_v10 = vpop.f32.mrf.mxu3  ;;  %815 = vmatpush.msra.mxu1 %v795_v8 }
  0xd3   : > { %v618_v17 = vadd.f32 %v617_v10, %v598_v13  ;;  %v793_v10 = vld [vmem:[%s1657_s9 + $0x20] sm:$0xff]  ;;  %v790_v13 = vld [vmem:[%s1657_s9 + $0x8] sm:$0xff] }
  0xd4   : > { %816 = vmatpush.msra.mxu1 %v794_v9 }
  0xd5   : > { %v928_v20 = vmul.f32 -1.442695, %v618_v17 }
  0xd6   : > { %v577_v2 = vpop.f32.mrf.mxu1  ;;  %817 = vmatpush.msra.mxu1 %v793_v10 }
  0xd7   : > { %954 = vpow2.f32 %v928_v20  ;;  %v578_v3 = vadd.f32 %v577_v2, %v558_v1 }
  0xd8   : > { %818 = vmatpush.msra.mxu1 %v792_v11 }
  0xd9   : > { %v927_v4 = vmul.f32 -1.442695, %v578_v3 }
  0xda   : > { %819 = vmatpush.msra.mxu1 %v791_v12 }
  0xdc   : > { %820 = vmatpush.msra.mxu1 %v790_v13 }
  0xdd   : > { %v955_v28 = vpop.eup %954 }
  0xde   : > { %v724_v29 = vadd.f32 1.0, %v955_v28  ;;  %821 = vmatpush.msra.mxu1 %v789_v15  ;;  %v762_v28 = vld [vmem:[%s1656_s8] sm:$0xff] }
  0xe0   : > { %956 = vrcp.f32 %v724_v29  ;;  %vm730_vm0 = vweird.f32 %v724_v29  ;;  %v736_v34 = vand.u32 2147483648, %v724_v29  ;;  %v734_v36 = vand.u32 2147483647, %v724_v29 }
  0xe2   : > { %v737_v40 = vor.u32 1.1754944e-38, %v736_v34  ;;  %vm735_vm3 = vcmp.eq.f32.partialorder %v734_v36, 8.507059e+37 }
  0xe6   : > { %v957_v30 = vpop.eup %956 }
  0xe7   : > { %v726_v31 = vmul.f32 %v957_v30, %v724_v29  ;;  %vm731_vm1 = vweird.f32 %v957_v30 }
  0xe8   : > { %vm732_vm2 = vmor %vm730_vm0, %vm731_vm1 }
  0xe9   : > { %v727_v32 = vsub.f32 1.0, %v726_v31 }
  0xeb   : > { %v728_v33 = vmul.f32 %v957_v30, %v727_v32 }
  0xed   : > { %v729_v37 = vadd.f32 %v957_v30, %v728_v33 }
  0xef   : > { %v733_v39 = vsel %vm732_vm2, %v957_v30, %v729_v37  ;;  %v637_v20 = vpop.f32.mrf.mxu0 }
  0xf0   : > { %v677_v41 = vpop.f32.mrf.mxu2  ;;  %v738_v45 = vsel %vm735_vm3, %v737_v40, %v733_v39  ;;  %v638_v26 = vadd.f32 %v637_v20, %v538_v22 }
  0xf1   : > { %v678_v43 = vadd.f32 %v677_v41, %v539_v38  ;;  %v740_v47 = vmul.f32 %v738_v45, %v719_v44  ;;  %v827_v41 = vld [vmem:[%s1115_s18] sm:$0xff] }
  0xf2   : > { %v697_v42 = vpop.f32.mrf.mxu3  ;;  %v805_v45 = vld [vmem:[%s1658_s10] sm:$0xff] }
  0xf3   : > { %v698_v46 = vadd.f32 %v697_v42, %v678_v43  ;;  %v741_v48 = vsub.f32 1.0, %v740_v47 }
  0xf5   : > { %958 = vtanh.f32 %v698_v46  ;;  %v742_v52 = vmul.f32 %v741_v48, %v404_v49 }
  0xf6   : > { %960 = vpow2.f32 %v927_v4 }
  0xf8   : > { %v657_v27 = vpop.f32.mrf.mxu1 }
  0xf9   : > { %v658_v31 = vadd.f32 %v657_v27, %v638_v26 }
  0xfb   : > { %v959_v50 = vpop.eup %958 }
  0xfc   : > { %v744_v51 = vmul.f32 %v959_v50, %v740_v47  ;;  %v961_v5 = vpop.eup %960 }
  0xfd   : > { %v703_v7 = vadd.f32 1.0, %v961_v5 }
  0xfe   : > { %v745_v54 = vadd.f32 %v744_v51, %v742_v52 }
  0xff   : > { %962 = vrcp.f32 %v703_v7  ;;  %vm709_vm4 = vweird.f32 %v703_v7  ;;  %v715_v21 = vand.u32 2147483648, %v703_v7  ;;  %v713_v24 = vand.u32 2147483647, %v703_v7 }
 0x100   : > { %779 = vmatmul.f32.vlgmr.msra.gmra.mxu0 %v745_v54  ;;  %v830_v55 = vadd.f32 %v828_v53, %v745_v54 }
 0x101   : > { %v716_v25 = vor.u32 1.1754944e-38, %v715_v21  ;;  %vm714_vm7 = vcmp.eq.f32.partialorder %v713_v24, 8.507059e+37 }
 0x102   : > { %832 = vst [vmem:[#allocation3] sm:$0xff] %v830_v55 }
 0x105   : > { %v963_v14 = vpop.eup %962 }
 0x106   : > { %v705_v17 = vmul.f32 %v963_v14, %v703_v7  ;;  %vm710_vm5 = vweird.f32 %v963_v14 }
 0x107   : > { %vm711_vm6 = vmor %vm709_vm4, %vm710_vm5 }
 0x108   : > { %v706_v18 = vsub.f32 1.0, %v705_v17 }
 0x10a   : > { %v707_v19 = vmul.f32 %v963_v14, %v706_v18 }
 0x10c   : > { %v708_v23 = vadd.f32 %v963_v14, %v707_v19 }
 0x10e   : > { %v712_v29 = vsel %vm711_vm6, %v963_v14, %v708_v23 }
 0x10f   : > { %v717_v33 = vsel %vm714_vm7, %v716_v25, %v712_v29 }
 0x110   : > { %v720_v36 = vmul.f32 %v719_v44, %v717_v33 }
 0x112   : > { %v783_v37 = vsub.f32 1.0, %v720_v36 }
 0x114   : > { %v784_v39 = vmul.f32 %v783_v37, %v1169_v16 }
 0x17d   : > { %v780_v30 = vpop.f32.mrf.mxu0 }
 0x17e   : > { %v781_v32 = vadd.f32 %v780_v30, %v762_v28 }
 0x180   : > { %v785_v34 = vadd.f32 %v781_v32, %v658_v31 }
 0x182   : > { %964 = vtanh.f32 %v785_v34 }
 0x188   : > { %v965_v38 = vpop.eup %964 }
 0x189   : > { %v787_v40 = vmul.f32 %v965_v38, %v720_v36 }
 0x18b   : > { %v788_v42 = vadd.f32 %v787_v40, %v784_v39 }
 0x18d   : > { %822 = vmatmul.f32.vlgmr.msra.gmra.mxu1 %v788_v42  ;;  %v829_v43 = vadd.f32 %v827_v41, %v788_v42 }
 0x18f   : > { %831 = vst [vmem:[#allocation2] sm:$0xff] %v829_v43 }
 0x190   : > { %833 = vst [vmem:[%s1123_s26] sm:$0xff] %v829_v43 }
 0x20a   : > { %v823_v46 = vpop.f32.mrf.mxu1 }
 0x20b   : > { %v824_v47 = vadd.f32 %v823_v46, %v805_v45 }
 0x20d   : > { %826 = vst [vmem:[#allocation4] sm:$0xff] %v824_v47 }
 0x20e PF: > { %s35_s25 = sadd.s32 1, %s1017_s25  }
 0x20f   : > { %p32_p11 = scmp.ge.s32.totalorder %s35_s25, 11  }
 0x211   :  { %34 = sbr.rel (!%p32_p11) target bundleno = 8 (0x8), region = 102 }
 0x216   :  { %856 = vsyncpa [#allocation9], 1 }
 0x217   :  { %858 = vsyncpa [#allocation9 + $0x1], 1 }

</bundles_post_ra>
